<compile_context>
chip_gen: v7x
topology: tpu7x:2x2x1
jax: 0.10.0
libtpu: 0.0.40
codegen_flags: <defaults>
</compile_context>

<pallas_src>
import functools

import jax
import jax.numpy as jnp
from jax.experimental import pallas as pl
from jax.experimental.pallas import tpu as pltpu


def affine_coupling_kernel(
    x_ref, mask_ref,
    w1_ref, b1_ref, w2_ref, b2_ref, w3_ref, b3_ref, scale_ref,
    y_ref, logdet_ref,
    *, mxu_dtype,
):
    x = x_ref[...].astype(jnp.float32)            # (D, TB)  batch on lanes
    mask = mask_ref[...].astype(jnp.float32)      # (D, 1)
    D = x.shape[0]

    xm = x * mask                                 # (D, TB)

    # ---- fused layer 1 on the VPU (K = D = 2 -> MXU would be ~2% utilized).
    # Kept in f32: v5e's VPU has no bf16 path, downcasting just adds converts.
    w1 = w1_ref[...]                              # (2H, D)
    acc = w1[:, 0:1] * xm[0:1, :]                 # (2H, 1)*(1, TB) -> (2H, TB)
    for d in range(1, D):                         # D is static (=2), unrolled
        acc = acc + w1[:, d:d + 1] * xm[d:d + 1, :]
    h = jnp.maximum(acc + b1_ref[...], 0.0)       # (2H, TB) f32

    # ---- fused layer 2 (block-diagonal) on the MXU: bf16 operands, f32 acc.
    h2 = jnp.dot(
        w2_ref[...].astype(mxu_dtype), h.astype(mxu_dtype),
        preferred_element_type=jnp.float32,
    ) + b2_ref[...]
    h2 = jnp.maximum(h2, 0.0)                     # (2H, TB) f32

    # ---- fused layer 3 (block-diagonal), then split into s / t halves ----
    o = jnp.dot(
        w3_ref[...].astype(mxu_dtype), h2.astype(mxu_dtype),
        preferred_element_type=jnp.float32,
    ) + b3_ref[...]
    s = jnp.maximum(o[:D, :], 0.0) * scale_ref[...]   # scale net has final relu
    t = o[D:, :]                                      # translation net does not

    # ---- coupling transform + log-determinant (all f32 on the VPU/EUP) ----
    one_minus_mask = 1.0 - mask
    y = mask * x + one_minus_mask * (x * jnp.exp(s) + t)
    y_ref[...] = y.astype(y_ref.dtype)
    logdet_ref[...] = jnp.sum(one_minus_mask * s, axis=0, keepdims=True).astype(
        logdet_ref.dtype
    )


def fuse_params(params):
    """Fuse the scale/translation MLPs and transpose for the (features, batch) layout.

    NOTE(perf): the block-diagonal (2H, 2H) w2 wastes half its MACs on
    structural zeros, which is free while 2H <= one MXU tile (128 on v5e,
    256 on v6e/v7x).  If hidden_dim is ever scaled so 2H exceeds that, stack
    the s/t hidden states along the lane (batch) axis instead and use a single
    (H, H) layer-2 weight; keep block-diag only for the tiny layer-3 weight.
    """
    D = params["mask"].shape[1]
    H = params["sw1"].shape[1]
    z_hh = jnp.zeros((H, H), jnp.float32)
    z_hd = jnp.zeros((H, D), jnp.float32)
    w1 = jnp.concatenate([params["sw1"], params["tw1"]], axis=1).T       # (2H, D)
    b1 = jnp.concatenate([params["sb1"], params["tb1"]], axis=1).T       # (2H, 1)
    w2 = jnp.block([[params["sw2"], z_hh], [z_hh, params["tw2"]]]).T     # (2H, 2H)
    b2 = jnp.concatenate([params["sb2"], params["tb2"]], axis=1).T       # (2H, 1)
    w3 = jnp.block([[params["sw3"], z_hd], [z_hd, params["tw3"]]]).T     # (2D, 2H)
    b3 = jnp.concatenate([params["sb3"], params["tb3"]], axis=1).T       # (2D, 1)
    return {
        "mask": params["mask"].T,      # (D, 1)
        "scale": params["scale"].T,    # (D, 1)
        "w1": w1, "b1": b1, "w2": w2, "b2": b2, "w3": w3, "b3": b3,
    }


def _pick_tile_b(B, tile_b):
    if tile_b is not None:
        return tile_b
    # Perf review: sweep tile_b in {512, 1024, 2048, 4096}; large tiles
    # amortize the ~0.35 us per-grid-step pipeline overhead (VMEM is a
    # non-issue: ~0.6 KiB per batch column).  Keep >= 2 grid steps so v7x's
    # two TensorCores both get work via the "parallel" axis.  On v5e a
    # somewhat smaller tile may win once the f32 (2H, TB) intermediates start
    # spilling (v5e has only one vst slot).
    for cand in (4096, 2048, 1024, 512, 256, 128):
        if B % cand == 0 and B // cand >= 2:
            return cand
    return B


def affine_coupling_forward_t(x_t, fused, *, tile_b=None, mxu_dtype=jnp.bfloat16):
    """Transpose-free path.  x_t: (D, B) features-first, float32.

    Returns (y_t, logdet) with y_t in (D, B) layout and logdet of shape (B,).
    In a stacked RealNVP, keep the (D, B) layout end-to-end across coupling
    layers so no HBM transposes are ever materialized.
    """
    D, B = x_t.shape
    H2 = fused["w1"].shape[0]        # = 2 * hidden_dim
    tile_b = _pick_tile_b(B, tile_b)
    assert B % tile_b == 0, "pad the batch to a multiple of tile_b (128)"
    assert tile_b % 128 == 0, "keep lane-dense tiles (unmasked vst)"

    def data_map(i):
        return (0, i)

    def param_map(i):
        return (0, 0)                # resident across grid steps (no re-DMA)

    grid_spec = pl.GridSpec(
        grid=(B // tile_b,),
        in_specs=[
            pl.BlockSpec((D, tile_b), data_map),       # x  (D, B)
            pl.BlockSpec((D, 1), param_map),           # mask
            pl.BlockSpec((H2, D), param_map),          # w1 fused (2H, D)
            pl.BlockSpec((H2, 1), param_map),          # b1
            pl.BlockSpec((H2, H2), param_map),         # w2 block-diag (2H, 2H)
            pl.BlockSpec((H2, 1), param_map),          # b2
            pl.BlockSpec((2 * D, H2), param_map),      # w3 block-diag (2D, 2H)
            pl.BlockSpec((2 * D, 1), param_map),       # b3
            pl.BlockSpec((D, 1), param_map),           # scale
        ],
        out_specs=[
            pl.BlockSpec((D, tile_b), data_map),       # y      (D, B)
            pl.BlockSpec((1, tile_b), data_map),       # logdet (1, B) lane-dense
        ],
    )

    kernel = functools.partial(affine_coupling_kernel, mxu_dtype=mxu_dtype)
    y_t, logdet = pl.pallas_call(
        kernel,
        out_shape=(
            jax.ShapeDtypeStruct((D, B), x_t.dtype),
            jax.ShapeDtypeStruct((1, B), jnp.float32),
        ),
        grid_spec=grid_spec,
        compiler_params=pltpu.CompilerParams(
            dimension_semantics=("parallel",),   # >= 2 grid steps -> both v7x TCs
        ),
    )(
        x_t,
        fused["mask"],
        fused["w1"], fused["b1"],
        fused["w2"], fused["b2"],
        fused["w3"], fused["b3"],
        fused["scale"],
    )
    return y_t, logdet[0]


def affine_coupling_forward(x, fused, *, tile_b=None, mxu_dtype=jnp.bfloat16):
    """(B, D) interface matching the PyTorch module's forward.

    NOTE(perf): the x.T / y.T below are standalone XLA transposes that each
    re-read and re-write the whole tensor in HBM.  Prefer
    affine_coupling_forward_t and keep the (D, B) layout end-to-end in the
    surrounding model so these transposes never materialize.
    """
    y_t, logdet = affine_coupling_forward_t(
        x.T, fused, tile_b=tile_b, mxu_dtype=mxu_dtype)
    return y_t.T, logdet


def reference_forward(x, params):
    """Pure-JAX reference mirroring the PyTorch module exactly (unfused)."""
    mask = params["mask"][0]
    xm = x * mask
    s = jax.nn.relu(xm @ params["sw1"] + params["sb1"][0])
    s = jax.nn.relu(s @ params["sw2"] + params["sb2"][0])
    s = jax.nn.relu(s @ params["sw3"] + params["sb3"][0]) * params["scale"][0]
    t = jax.nn.relu(xm @ params["tw1"] + params["tb1"][0])
    t = jax.nn.relu(t @ params["tw2"] + params["tb2"][0])
    t = t @ params["tw3"] + params["tb3"][0]
    y = mask * x + (1 - mask) * (x * jnp.exp(s) + t)
    logdet = jnp.sum((1 - mask) * s, -1)
    return y, logdet


def init_params(key, input_dim, hidden_dim, mask):
    """Deterministic synthetic init (shapes match the PyTorch __init__)."""
    ks = jax.random.split(key, 13)

    def linear(kw, kb, fan_in, fan_out):
        # mimic nn.Linear's uniform(-1/sqrt(fan_in), 1/sqrt(fan_in)); weight
        # stored as (in, out) so x @ W + b matches the PyTorch forward.
        bound = 1.0 / jnp.sqrt(fan_in)
        w = jax.random.uniform(kw, (fan_in, fan_out), jnp.float32, -bound, bound)
        b = jax.random.uniform(kb, (1, fan_out), jnp.float32, -bound, bound)
        return w, b

    sw1, sb1 = linear(ks[0], ks[1], input_dim, hidden_dim)
    sw2, sb2 = linear(ks[2], ks[3], hidden_dim, hidden_dim)
    sw3, sb3 = linear(ks[4], ks[5], hidden_dim, input_dim)
    tw1, tb1 = linear(ks[6], ks[7], input_dim, hidden_dim)
    tw2, tb2 = linear(ks[8], ks[9], hidden_dim, hidden_dim)
    tw3, tb3 = linear(ks[10], ks[11], hidden_dim, input_dim)
    scale = jax.random.normal(ks[12], (1, input_dim), jnp.float32)  # init.normal_

    return {
        "mask": mask.reshape(1, input_dim).astype(jnp.float32),
        "sw1": sw1, "sb1": sb1, "sw2": sw2, "sb2": sb2, "sw3": sw3, "sb3": sb3,
        "scale": scale,
        "tw1": tw1, "tb1": tb1, "tw2": tw2, "tb2": tb2, "tw3": tw3, "tb3": tb3,
    }


if __name__ == "__main__":
    key = jax.random.PRNGKey(0)
    # 2 grid steps of tile_b=1024 lanes each (auto-picked); D=2, H=32 as in
    # the RealNVP-2D module.
    B, INPUT_DIM, HIDDEN_DIM = 2048, 2, 32

    # RealNVP-2D checkerboard mask over the 2 coordinates: [1, 0]
    mask = jnp.array([1.0, 0.0], dtype=jnp.float32)

    kx, kp = jax.random.split(key)
    x = jax.random.normal(kx, (B, INPUT_DIM), jnp.float32)
    params = init_params(kp, INPUT_DIM, HIDDEN_DIM, mask)
    fused = fuse_params(params)

    y_ref, logdet_ref = reference_forward(x, params)

    # 1) Transpose-free features-first path (preferred in a stacked model),
    #    bf16 MXU operands (default).
    x_t = x.T                                             # test-harness only
    y_t, ld = jax.block_until_ready(affine_coupling_forward_t(x_t, fused))
    assert y_t.shape == (INPUT_DIM, B) and ld.shape == (B,)
    assert jnp.allclose(y_t.T, y_ref, atol=5e-2, rtol=5e-2)
    assert jnp.allclose(ld, logdet_ref, atol=5e-2, rtol=5e-2)

    # 2) f32 MXU mode: tight-tolerance structural check.
    y_t32, ld32 = jax.block_until_ready(
        affine_coupling_forward_t(x_t, fused, mxu_dtype=jnp.float32))
    assert jnp.allclose(y_t32.T, y_ref, atol=1e-5, rtol=1e-5)
    assert jnp.allclose(ld32, logdet_ref, atol=1e-5, rtol=1e-5)

    # 3) (B, D) module-interface wrapper (carries the two HBM transposes).
    y, ld_b = jax.block_until_ready(affine_coupling_forward(x, fused))
    assert y.shape == (B, INPUT_DIM) and ld_b.shape == (B,)
    assert jnp.allclose(y, y_ref, atol=5e-2, rtol=5e-2)
    assert jnp.allclose(ld_b, logdet_ref, atol=5e-2, rtol=5e-2)

    print("KERNEL_OK")
</pallas_src>

<mosaic_0001>
module attributes {stable_mosaic.version = 11 : i64} {
  func.func @affine_coupling_kernel(%arg0: i32, %arg1: memref<2x1024xf32, #tpu.memory_space<vmem>>, %arg2: memref<2x1xf32, #tpu.memory_space<vmem>>, %arg3: memref<64x2xf32, #tpu.memory_space<vmem>>, %arg4: memref<64x1xf32, #tpu.memory_space<vmem>>, %arg5: memref<64x64xf32, #tpu.memory_space<vmem>>, %arg6: memref<64x1xf32, #tpu.memory_space<vmem>>, %arg7: memref<4x64xf32, #tpu.memory_space<vmem>>, %arg8: memref<4x1xf32, #tpu.memory_space<vmem>>, %arg9: memref<2x1xf32, #tpu.memory_space<vmem>>, %arg10: memref<2x1024xf32, #tpu.memory_space<vmem>>, %arg11: memref<1x1024xf32, #tpu.memory_space<vmem>>) attributes {dimension_semantics = [#tpu.dimension_semantics<parallel>], iteration_bounds = array<i64: 2>, scalar_prefetch = 0 : i64, scratch_operands = 0 : i64, tpu.core_type = #tpu.core_type<tc>, window_params = [{transform_indices = @transform_0, window_bounds = array<i64: 2, 1024>}, {pipeline_mode = #tpu.pipeline_mode<synchronous>, transform_indices = @transform_1, window_bounds = array<i64: 2, 1>}, {pipeline_mode = #tpu.pipeline_mode<synchronous>, transform_indices = @transform_2, window_bounds = array<i64: 64, 2>}, {pipeline_mode = #tpu.pipeline_mode<synchronous>, transform_indices = @transform_3, window_bounds = array<i64: 64, 1>}, {pipeline_mode = #tpu.pipeline_mode<synchronous>, transform_indices = @transform_4, window_bounds = array<i64: 64, 64>}, {pipeline_mode = #tpu.pipeline_mode<synchronous>, transform_indices = @transform_5, window_bounds = array<i64: 64, 1>}, {pipeline_mode = #tpu.pipeline_mode<synchronous>, transform_indices = @transform_6, window_bounds = array<i64: 4, 64>}, {pipeline_mode = #tpu.pipeline_mode<synchronous>, transform_indices = @transform_7, window_bounds = array<i64: 4, 1>}, {pipeline_mode = #tpu.pipeline_mode<synchronous>, transform_indices = @transform_8, window_bounds = array<i64: 2, 1>}, {transform_indices = @transform_9, window_bounds = array<i64: 2, 1024>}, {transform_indices = @transform_10, window_bounds = array<i64: 1, 1024>}]} {
    %c0 = arith.constant 0 : index
    %c0_0 = arith.constant 0 : index
    %0 = vector.load %arg1[%c0, %c0_0] : memref<2x1024xf32, #tpu.memory_space<vmem>>, vector<2x1024xf32>
    %c0_1 = arith.constant 0 : index
    %c0_2 = arith.constant 0 : index
    %1 = vector.load %arg2[%c0_1, %c0_2] : memref<2x1xf32, #tpu.memory_space<vmem>>, vector<2x1xf32>
    %2 = vector.broadcast %1 : vector<2x1xf32> to vector<2x1024xf32>
    %3 = arith.mulf %0, %2 : vector<2x1024xf32>
    %c0_3 = arith.constant 0 : index
    %c0_4 = arith.constant 0 : index
    %4 = vector.load %arg3[%c0_3, %c0_4] : memref<64x2xf32, #tpu.memory_space<vmem>>, vector<64x2xf32>
    %5 = vector.extract_strided_slice %4 {offsets = [0, 0], sizes = [64, 1], strides = [1, 1]} : vector<64x2xf32> to vector<64x1xf32>
    %6 = vector.extract_strided_slice %3 {offsets = [0, 0], sizes = [1, 1024], strides = [1, 1]} : vector<2x1024xf32> to vector<1x1024xf32>
    %7 = vector.broadcast %5 : vector<64x1xf32> to vector<64x1024xf32>
    %8 = vector.broadcast %6 : vector<1x1024xf32> to vector<64x1024xf32>
    %9 = arith.mulf %7, %8 : vector<64x1024xf32>
    %10 = vector.extract_strided_slice %4 {offsets = [0, 1], sizes = [64, 1], strides = [1, 1]} : vector<64x2xf32> to vector<64x1xf32>
    %11 = vector.extract_strided_slice %3 {offsets = [1, 0], sizes = [1, 1024], strides = [1, 1]} : vector<2x1024xf32> to vector<1x1024xf32>
    %12 = vector.broadcast %10 : vector<64x1xf32> to vector<64x1024xf32>
    %13 = vector.broadcast %11 : vector<1x1024xf32> to vector<64x1024xf32>
    %14 = arith.mulf %12, %13 : vector<64x1024xf32>
    %15 = arith.addf %9, %14 : vector<64x1024xf32>
    %c0_5 = arith.constant 0 : index
    %c0_6 = arith.constant 0 : index
    %16 = vector.load %arg4[%c0_5, %c0_6] : memref<64x1xf32, #tpu.memory_space<vmem>>, vector<64x1xf32>
    %17 = vector.broadcast %16 : vector<64x1xf32> to vector<64x1024xf32>
    %18 = arith.addf %15, %17 : vector<64x1024xf32>
    %cst = arith.constant 0.000000e+00 : f32
    %19 = vector.broadcast %cst : f32 to vector<64x1024xf32>
    %20 = arith.maximumf %18, %19 : vector<64x1024xf32>
    %c0_7 = arith.constant 0 : index
    %c0_8 = arith.constant 0 : index
    %21 = vector.load %arg5[%c0_7, %c0_8] : memref<64x64xf32, #tpu.memory_space<vmem>>, vector<64x64xf32>
    %22 = arith.truncf %21 : vector<64x64xf32> to vector<64x64xbf16>
    %23 = arith.truncf %20 : vector<64x1024xf32> to vector<64x1024xbf16>
    %cst_9 = arith.constant dense<0.000000e+00> : vector<64x1024xf32>
    %24 = tpu.matmul %22, %23, %cst_9 {dimension_numbers = #tpu.dot_dimension_numbers<[1], [0], [0], [1], [0, 0, 1, 1], [], []>} : vector<64x64xbf16>, vector<64x1024xbf16>, vector<64x1024xf32> -> vector<64x1024xf32>
    %c0_10 = arith.constant 0 : index
    %c0_11 = arith.constant 0 : index
    %25 = vector.load %arg6[%c0_10, %c0_11] : memref<64x1xf32, #tpu.memory_space<vmem>>, vector<64x1xf32>
    %26 = vector.broadcast %25 : vector<64x1xf32> to vector<64x1024xf32>
    %27 = arith.addf %24, %26 : vector<64x1024xf32>
    %cst_12 = arith.constant 0.000000e+00 : f32
    %28 = vector.broadcast %cst_12 : f32 to vector<64x1024xf32>
    %29 = arith.maximumf %27, %28 : vector<64x1024xf32>
    %c0_13 = arith.constant 0 : index
    %c0_14 = arith.constant 0 : index
    %30 = vector.load %arg7[%c0_13, %c0_14] : memref<4x64xf32, #tpu.memory_space<vmem>>, vector<4x64xf32>
    %31 = arith.truncf %30 : vector<4x64xf32> to vector<4x64xbf16>
    %32 = arith.truncf %29 : vector<64x1024xf32> to vector<64x1024xbf16>
    %cst_15 = arith.constant dense<0.000000e+00> : vector<4x1024xf32>
    %33 = tpu.matmul %31, %32, %cst_15 {dimension_numbers = #tpu.dot_dimension_numbers<[1], [0], [0], [1], [0, 0, 1, 1], [], []>} : vector<4x64xbf16>, vector<64x1024xbf16>, vector<4x1024xf32> -> vector<4x1024xf32>
    %c0_16 = arith.constant 0 : index
    %c0_17 = arith.constant 0 : index
    %34 = vector.load %arg8[%c0_16, %c0_17] : memref<4x1xf32, #tpu.memory_space<vmem>>, vector<4x1xf32>
    %35 = vector.broadcast %34 : vector<4x1xf32> to vector<4x1024xf32>
    %36 = arith.addf %33, %35 : vector<4x1024xf32>
    %37 = vector.extract_strided_slice %36 {offsets = [0, 0], sizes = [2, 1024], strides = [1, 1]} : vector<4x1024xf32> to vector<2x1024xf32>
    %cst_18 = arith.constant 0.000000e+00 : f32
    %38 = vector.broadcast %cst_18 : f32 to vector<2x1024xf32>
    %39 = arith.maximumf %37, %38 : vector<2x1024xf32>
    %c0_19 = arith.constant 0 : index
    %c0_20 = arith.constant 0 : index
    %40 = vector.load %arg9[%c0_19, %c0_20] : memref<2x1xf32, #tpu.memory_space<vmem>>, vector<2x1xf32>
    %41 = vector.broadcast %40 : vector<2x1xf32> to vector<2x1024xf32>
    %42 = arith.mulf %39, %41 : vector<2x1024xf32>
    %43 = vector.extract_strided_slice %36 {offsets = [2, 0], sizes = [2, 1024], strides = [1, 1]} : vector<4x1024xf32> to vector<2x1024xf32>
    %cst_21 = arith.constant 1.000000e+00 : f32
    %44 = vector.broadcast %cst_21 : f32 to vector<2x1xf32>
    %45 = arith.subf %44, %1 : vector<2x1xf32>
    %46 = vector.broadcast %1 : vector<2x1xf32> to vector<2x1024xf32>
    %47 = arith.mulf %46, %0 : vector<2x1024xf32>
    %48 = math.exp %42 : vector<2x1024xf32>
    %49 = arith.mulf %0, %48 : vector<2x1024xf32>
    %50 = arith.addf %49, %43 : vector<2x1024xf32>
    %51 = vector.broadcast %45 : vector<2x1xf32> to vector<2x1024xf32>
    %52 = arith.mulf %51, %50 : vector<2x1024xf32>
    %53 = arith.addf %47, %52 : vector<2x1024xf32>
    %c0_22 = arith.constant 0 : index
    %c0_23 = arith.constant 0 : index
    %54 = vector.load %arg10[%c0_22, %c0_23] : memref<2x1024xf32, #tpu.memory_space<vmem>>, vector<2x1024xf32>
    tpu.vector_store %arg10[%c0_22, %c0_23], %53 {strides = array<i32>} : memref<2x1024xf32, #tpu.memory_space<vmem>>, vector<2x1024xf32>,
    %55 = vector.broadcast %45 : vector<2x1xf32> to vector<2x1024xf32>
    %56 = arith.mulf %55, %42 : vector<2x1024xf32>
    %cst_24 = arith.constant dense<0.000000e+00> : vector<1024xf32>
    %57 = vector.multi_reduction <add>, %56, %cst_24 [0] : vector<2x1024xf32> to vector<1024xf32>
    %58 = vector.shape_cast %57 : vector<1024xf32> to vector<1x1024xf32>
    %c0_25 = arith.constant 0 : index
    %c0_26 = arith.constant 0 : index
    %59 = vector.load %arg11[%c0_25, %c0_26] : memref<1x1024xf32, #tpu.memory_space<vmem>>, vector<1x1024xf32>
    tpu.vector_store %arg11[%c0_25, %c0_26], %58 {strides = array<i32>} : memref<1x1024xf32, #tpu.memory_space<vmem>>, vector<1x1024xf32>,
    return
  }
  func.func @transform_0(%arg0: i32) -> (i32, i32) {
    %c0_i32 = arith.constant 0 : i32
    %c0_i32_0 = arith.constant 0 : i32
    return %c0_i32, %arg0 : i32, i32
  }
  func.func @transform_1(%arg0: i32) -> (i32, i32) {
    %c0_i32 = arith.constant 0 : i32
    %c0_i32_0 = arith.constant 0 : i32
    %c0_i32_1 = arith.constant 0 : i32
    return %c0_i32, %c0_i32_0 : i32, i32
  }
  func.func @transform_2(%arg0: i32) -> (i32, i32) {
    %c0_i32 = arith.constant 0 : i32
    %c0_i32_0 = arith.constant 0 : i32
    %c0_i32_1 = arith.constant 0 : i32
    return %c0_i32, %c0_i32_0 : i32, i32
  }
  func.func @transform_3(%arg0: i32) -> (i32, i32) {
    %c0_i32 = arith.constant 0 : i32
    %c0_i32_0 = arith.constant 0 : i32
    %c0_i32_1 = arith.constant 0 : i32
    return %c0_i32, %c0_i32_0 : i32, i32
  }
  func.func @transform_4(%arg0: i32) -> (i32, i32) {
    %c0_i32 = arith.constant 0 : i32
    %c0_i32_0 = arith.constant 0 : i32
    %c0_i32_1 = arith.constant 0 : i32
    return %c0_i32, %c0_i32_0 : i32, i32
  }
  func.func @transform_5(%arg0: i32) -> (i32, i32) {
    %c0_i32 = arith.constant 0 : i32
    %c0_i32_0 = arith.constant 0 : i32
    %c0_i32_1 = arith.constant 0 : i32
    return %c0_i32, %c0_i32_0 : i32, i32
  }
  func.func @transform_6(%arg0: i32) -> (i32, i32) {
    %c0_i32 = arith.constant 0 : i32
    %c0_i32_0 = arith.constant 0 : i32
    %c0_i32_1 = arith.constant 0 : i32
    return %c0_i32, %c0_i32_0 : i32, i32
  }
  func.func @transform_7(%arg0: i32) -> (i32, i32) {
    %c0_i32 = arith.constant 0 : i32
    %c0_i32_0 = arith.constant 0 : i32
    %c0_i32_1 = arith.constant 0 : i32
    return %c0_i32, %c0_i32_0 : i32, i32
  }
  func.func @transform_8(%arg0: i32) -> (i32, i32) {
    %c0_i32 = arith.constant 0 : i32
    %c0_i32_0 = arith.constant 0 : i32
    %c0_i32_1 = arith.constant 0 : i32
    return %c0_i32, %c0_i32_0 : i32, i32
  }
  func.func @transform_9(%arg0: i32) -> (i32, i32) {
    %c0_i32 = arith.constant 0 : i32
    %c0_i32_0 = arith.constant 0 : i32
    return %c0_i32, %arg0 : i32, i32
  }
  func.func @transform_10(%arg0: i32) -> (i32, i32) {
    %c0_i32 = arith.constant 0 : i32
    %c0_i32_0 = arith.constant 0 : i32
    return %c0_i32, %arg0 : i32, i32
  }
}

</mosaic_0001>

<bundles_post_ra>
// kernel: tpu_custom_call.1
= control target key start
LH: loop header
LB: loop body
LE: loop exit
PB: predicated region body
PF: predicated region fallthrough
CT: control target
= control target key end

     0   :  { %s3494_s0 = inlined_call_operand.vmem [shape: f32[2,2048], index: 0, kind: input, shape index: {}]   ;;  %s3495_s1 = inlined_call_operand.vmem [shape: f32[2,1], index: 1, kind: input, shape index: {}]   ;;  %s3496_s2 = inlined_call_operand.vmem [shape: f32[64,2], index: 2, kind: input, shape index: {}]   ;;  %s3497_s3 = inlined_call_operand.vmem [shape: f32[64,1], index: 3, kind: input, shape index: {}]   ;;  %s3498_s4 = inlined_call_operand.vmem [shape: f32[64,64], index: 4, kind: input, shape index: {}]   ;;  %s3499_s5 = inlined_call_operand.vmem [shape: f32[64,1], index: 5, kind: input, shape index: {}]   ;;  %s3500_s6 = inlined_call_operand.vmem [shape: f32[4,64], index: 6, kind: input, shape index: {}]   ;;  %s3501_s7 = inlined_call_operand.vmem [shape: f32[4,1], index: 7, kind: input, shape index: {}]   ;;  %s3502_s8 = inlined_call_operand.vmem [shape: f32[2,1], index: 8, kind: input, shape index: {}]   ;;  %s3503_s9 = inlined_call_operand.hbm [shape: f32[2,2048], index: 9, kind: output, shape index: {0}]   ;;  %s3504_s10 = inlined_call_operand.hbm [shape: f32[1,2048], index: 10, kind: output, shape index: {1}]  }
   0x1   :  { %3547 = sst [smem:[#allocation29_spill]] %s3494_s0 }
   0x2   :  { %3548 = sst [smem:[#allocation30_spill]] %s3495_s1 }
   0x3   :  { %16 = vsyncpa [#allocation3], 0 }
   0x4   :  { %18 = vsyncpa [#allocation3 + $0x1], 0 }
   0x5   :  { %19 = vsyncpa [#allocation5], 0 }
   0x6   :  { %21 = vsyncpa [#allocation5 + $0x1], 0  ;;  %s2413_s13 = smov 0   ;;  %s2415_s14 = smov 0  }
   0x7   :  { %s2417_s15 = smov 0   ;;  %s2419_s16 = smov 0  }
   0x8 LB: > { %s2434_s17 = sadd.s32 4294967295, %s2349_s16   ;;  %s2138_s18 = sadd.s32 4294967294, %s2349_s16   ;;  %s2349_s16 = sphi %s2419_s16, %s3603_s16   ;;  %s2345_s15 = sphi %s2417_s15, %s3602_s15   ;;  %s2341_s14 = sphi %s2415_s14, %s3601_s14   ;;  %s2337_s13 = sphi %s2413_s13, %s3600_s13  }
   0x9   : > { %s2438_s19 = sadd.s32 1, %s2349_s16   ;;  %s228_s20 = sadd.s32 1, %s2345_s15 }
   0xa   : > { %s225_s21 = ssub.s32 %s2349_s16, %s2438_s19  ;;  %p238_p0 = scmp.ne.s32.totalorder %s2345_s15, %s2341_s14 }
   0xb   : > { %p226_p1 = scmp.eq.s32.totalorder %s225_s21, 0  ;;  %p239_p2 = scmp.eq.s32.totalorder %s2434_s17, 1 }
   0xc   : > { %p244_p3 = scmp.ne.s32.totalorder %s2341_s14, %s2337_s13  ;;  %p245_p4 = scmp.eq.s32.totalorder %s2138_s18, 1 }
   0xd   : > { %s2449_s22 = scalar_select %p226_p1, %s2345_s15, %s228_s20  }
   0xe   : > { %p2451_p5 = por %p239_p2, %p238_p0  ;;  %p2455_p6 = por %p245_p4, %p244_p3 }
   0xf   : > { %p2141_p7 = scmp.ge.s32.totalorder %s2349_s16, 1  ;;  %p322_p8 = scmp.lt.s32.totalorder %s2349_s16, 3 }
  0x11   : > { %p323_p9 = pnand %p2141_p7, %p322_p8 }
  0x13   : > { %326 = sbr.rel (%p323_p9) target bundleno = 806 (0x326), region = 56 }
  0x1a   : > { %v392_v0 = vld [vmem:[%s3496_s2 + $0x8] sm:$0xff]  ;;  %s3551_s1 = sld [smem:[#allocation30_spill]]  ;;  %v3505_v2 = vmov 0   ;;  %v391_v3 = vld [vmem:[%s3496_s2] sm:$0xff]  ;;  %v2352_v4 = vmov 1   ;;  %v393_v5 = vld [vmem:[%s3496_s2 + $0x10] sm:$0xff]  ;;  %v384_v32 = vlaneseq }
  0x1b   : > { %2226 = vset.pattern.permute.xlu1 %v3505_v2  ;;  %2225 = vset.pattern.permute.xlu0 %v3505_v2  ;;  %v396_v6 = vld [vmem:[%s3496_s2 + $0x28] sm:$0xff]  ;;  %v394_v7 = vld [vmem:[%s3496_s2 + $0x18] sm:$0xff]  ;;  %v809_v10 = vld [vmem:[%s3497_s3] sm:$0xff]  ;;  %s2144_s21 = sshll.u32 %s2434_s17, 3  ;;  %v2353_v30 = vmov 269488144  }
  0x1c   : > { %406 = vperm.xlu1 %2226, %v392_v0   ;;  %1122 = vmatprep.mubr.bf16.mxu0 %v3505_v2  ;;  %v398_v8 = vld [vmem:[%s3496_s2 + $0x38] sm:$0xff]  ;;  %v810_v9 = vld [vmem:[%s3497_s3 + $0x8] sm:$0xff]  ;;  %v395_v11 = vld [vmem:[%s3496_s2 + $0x20] sm:$0xff]  ;;  %p366_p10 = scmp.lt.s32.totalorder %s2144_s21, 15  ;;  %v382_v31 = vunpack.c.l.s4 %v2353_v30  ;;  %v2556_v34 = vshrl.u32 %v384_v32, 7  ;;  %s3553_s0 = sld [smem:[#allocation29_spill]] }
  0x1d   : > { %1195 = vmatprep.mubr.bf16.mxu1 %v3505_v2  ;;  %v397_v12 = vld [vmem:[%s3496_s2 + $0x30] sm:$0xff]  ;;  %v812_v15 = vld [vmem:[%s3497_s3 + $0x18] sm:$0xff]  ;;  %v1030_v16 = vld [vmem:[%s3499_s5 + $0x8] sm:$0xff]  ;;  %vm1077_vm0 = vcmask 523264   ;;  %vm1897_vm1 = vcmask 1041408   ;;  %s3382_s26 = sand.u32 1, %s2341_s14  }
  0x1e   : > { %v811_v13 = vld [vmem:[%s3497_s3 + $0x10] sm:$0xff]  ;;  %v1032_v17 = vld [vmem:[%s3499_s5 + $0x18] sm:$0xff]  ;;  %v1034_v18 = vld [vmem:[%s3499_s5 + $0x28] sm:$0xff]  ;;  %s3605_s21 = smov (!%p366_p10, %s2144_s21), 15  ;;  %v383_v33 = vunpack.c.0.s8 %v382_v31  ;;  %3552 = vst [vmem:[#allocation8_spill] sm:$0xff] %v2556_v34  ;;  %v2572_v41 = vsub.s32 0, %v2556_v34 }
  0x1f   : > { %v815_v14 = vld [vmem:[%s3497_s3 + $0x30] sm:$0xff]  ;;  %v1036_v19 = vld [vmem:[%s3499_s5 + $0x38] sm:$0xff]  ;;  %v813_v20 = vld [vmem:[%s3497_s3 + $0x20] sm:$0xff]  ;;  %s2145_s25 = sshll.u32 %s3605_s21, 1  ;;  %v451_v42 = vsub.s32 4, %v2556_v34  ;;  %v2576_v43 = vsub.s32 1, %v2556_v34 }
  0x20   : > { %v2467_v1 = vld [vmem:[%s3551_s1] sm:$0x3]  ;;  %2227 = vset.pattern.permute.xlu1 %v2352_v4  ;;  %v814_v22 = vld [vmem:[%s3497_s3 + $0x28] sm:$0xff]  ;;  %v816_v23 = vld [vmem:[%s3497_s3 + $0x38] sm:$0xff]  ;;  %v386_v35 = vsub.s32 %v383_v33, %v2556_v34  ;;  %v3510_v48 = vsub.s32 2, %v2556_v34  ;;  %v3509_v49 = vsub.s32 3, %v2556_v34 }
  0x21   : > { %379 = vperm.xlu0 %2225, %v2467_v1   ;;  %578 = vperm.xlu1 %2227, %v391_v3   ;;  %v1661_v21 = vld [vmem:[%s3502_s8] sm:$0x3]  ;;  %v1031_v25 = vld [vmem:[%s3499_s5 + $0x10] sm:$0xff]  ;;  %v1675_v29 = vsub.f32 1.0, %v2467_v1  ;;  %v986_v45 = vld [vmem:[%s3498_s4 + $0x8] sm:$0xff]  ;;  %v3508_v50 = vsub.s32 6, %v2556_v34 }
  0x22   : > { %v1029_v24 = vld [vmem:[%s3499_s5] sm:$0xff]  ;;  %v1035_v27 = vld [vmem:[%s3499_s5 + $0x30] sm:$0xff]  ;;  %s2562_s28 = scalar_lea.vmem %s3553_s0, %s2145_s25  ;;  %v988_v47 = vld [vmem:[%s3498_s4 + $0x18] sm:$0xff]  ;;  %v3507_v51 = vsub.s32 7, %v2556_v34  ;;  %v619_v54 = vsub.s32 5, %v2556_v34  ;;  %s2142_s27 = sshll.u32 %s3382_s26, 4 }
  0x23   : > { %v1033_v26 = vld [vmem:[%s3499_s5 + $0x20] sm:$0xff]  ;;  %v375_v39 = vld [vmem:[%s2562_s28 + $0x8] sm:$0xff]  ;;  %v987_v46 = vld [vmem:[%s3498_s4 + $0x10] sm:$0xff]  ;;  %s3392_s29 = scalar_lea.vmem [#allocation2], %s2142_s27  ;;  %s2143_s30 = sshll.u32 %s3382_s26, 3 }
  0x24   : > { %v1480_v28 = vld [vmem:[%s3501_s7] sm:$0xf]  ;;  %v990_v53 = vld [vmem:[%s3498_s4 + $0x28] sm:$0xff]  ;;  %v2604_v58 = vpack.c.bf16 %v988_v47, %v987_v46  ;;  %v991_v59 = vld [vmem:[%s3498_s4 + $0x30] sm:$0xff]  ;;  %s2175_s11 = sshll.u32 %s2434_s17, 7  ;;  %s364_s12 = scalar_lea.vmem [#allocation4], %s2143_s30 }
  0x25   : > { %2228 = vset.pattern.permute.xlu0 %v2352_v4  ;;  %2229 = vset.pattern.permute.xlu1 %v3505_v2  ;;  %v374_v38 = vld [vmem:[%s2562_s28] sm:$0xff]  ;;  %v992_v60 = vld [vmem:[%s3498_s4 + $0x38] sm:$0xff]  ;;  %s2047_s18 = sshll.u32 %s364_s12, 4  ;;  %s3411_s21 = scalar_lea.hbm %s3504_s10, %s2175_s11  ;;  %s3413_s18 = int_to_ptr.vmem [resolvable:$true] %s2047_s18 }
  0x26   : > { %582 = vperm.xlu0 %2228, %v392_v0   ;;  %411 = vperm.xlu1 %2229, %v393_v5   ;;  %v985_v40 = vld [vmem:[%s3498_s4] sm:$0xff]  ;;  %3557 = vst [vmem:[#allocation12_spill] sm:$0xff] %v2604_v58  ;;  %s2019_s25 = scalar_lea.sflag [#allocation5], %s3382_s26  ;;  %s2255_s27 = scalar_lea.vmem %s3413_s18, 128 }
  0x27   : > { %v989_v52 = vld [vmem:[%s3498_s4 + $0x20] sm:$0xff]  ;;  %v2602_v57 = vpack.c.bf16 %v986_v45, %v985_v40  ;;  %p2256_p11 = scmp.ne.s32.totalorder %s3413_s18, %s2255_s27  ;;  %s2356_s30 = smov [#allocation4]  }
  0x28   : > { %s2259_s0 = sshll.u32 %s2356_s30, 4  ;;  %s2260_s0 = int_to_ptr.vmem [resolvable:$false] %s2259_s0 }
  0x29   : > { %3556 = vst [vmem:[#allocation11_spill] sm:$0xff] %v2602_v57  ;;  %p2257_p12 = pnand %p2256_p11, %p2451_p5  ;;  %s2261_s11 = scalar_lea.vmem %s2260_s0, 256 }
  0x2a   : > { %586 = vperm.xlu0 %2228, %v393_v5   ;;  %416 = vperm.xlu1 %2229, %v394_v7   ;;  %p2262_p0 = scmp.lt.s32.totalorder %s3413_s18, %s2260_s0  ;;  %p2263_p1 = scmp.lt.s32.totalorder %s2261_s11, %s2255_s27 }
  0x2b   : > { %p2258_p13 = pneg %p2257_p12 }
  0x2c   : > { %p2264_p2 = por %p2263_p1, %p2262_p0 }
  0x2e   : > { %598 = vperm.xlu0 %2228, %v396_v6   ;;  %2230 = vset.pattern.permute.xlu1 %v2352_v4  ;;  %p2265_p3 = pnand %p2264_p2, %p2258_p13 }
  0x2f   : > { %590 = vperm.xlu1 %2230, %v394_v7  }
  0x32   : > { %606 = vperm.xlu0 %2228, %v398_v8  }
  0x33   : > { %2231 = vset.pattern.permute.xlu1 %v3505_v2 }
  0x34   : > { %824 = vperm.xlu1 %2231, %v810_v9  }
  0x36   : > { %2235 = vset.pattern.permute.xlu0 %v3505_v2 }
  0x37   : > { %401 = vperm.xlu0 %2235, %v391_v3   ;;  %v2621_v3 = vpack.c.bf16 %v990_v53, %v989_v52 }
  0x38   : > { %421 = vperm.xlu1 %2231, %v395_v11  }
  0x39   : > { %3558 = vst [vmem:[#allocation13_spill] sm:$0xff] %v2621_v3  ;;  %v3566_v3 = vsub.s32 3, %v2556_v34 }
  0x3b   : > { %819 = vperm.xlu0 %2235, %v809_v10  }
  0x3c   : > { %2232 = vset.pattern.permute.xlu1 %v2352_v4 }
  0x3d   : > { %594 = vperm.xlu1 %2232, %v395_v11   ;;  %v2642_v11 = vpack.c.bf16 %v992_v60, %v991_v59 }
  0x3f   : > { %426 = vperm.xlu0 %2235, %v396_v6   ;;  %3559 = vst [vmem:[#allocation14_spill] sm:$0xff] %v2642_v11 }
  0x41   : > { %2233 = vset.pattern.permute.xlu1 %v3505_v2 }
  0x42   : > { %829 = vperm.xlu1 %2233, %v811_v13  }
  0x43   : > { %431 = vperm.xlu0 %2235, %v397_v12  }
  0x46   : > { %834 = vperm.xlu1 %2233, %v812_v15  }
  0x47   : > { %849 = vperm.xlu0 %2235, %v815_v14  }
  0x4a   : > { %436 = vperm.xlu1 %2233, %v398_v8  }
  0x4b   : > { %1044 = vperm.xlu0 %2235, %v1030_v16  }
  0x4e   : > { %2234 = vset.pattern.permute.xlu1 %v2352_v4 }
  0x4f   : > { %1054 = vperm.xlu0 %2235, %v1032_v17   ;;  %602 = vperm.xlu1 %2234, %v397_v12  }
  0x53   : > { %1064 = vperm.xlu0 %2235, %v1034_v18   ;;  %2236 = vset.pattern.permute.xlu1 %v3505_v2 }
  0x54   : > { %839 = vperm.xlu1 %2236, %v813_v20  }
  0x57   : > { %1074 = vperm.xlu0 %2235, %v1036_v19  }
  0x58   : > { %844 = vperm.xlu1 %2236, %v814_v22  }
  0x5b   : > { %1664 = vperm.xlu0 %2235, %v1661_v21  }
  0x5c   : > { %854 = vperm.xlu1 %2236, %v816_v23  }
  0x60   : > { %1039 = vperm.xlu1 %2236, %v1029_v24  }
  0x64   : > { %1049 = vperm.xlu1 %2236, %v1031_v25  }
  0x68   : > { %1059 = vperm.xlu1 %2236, %v1033_v26  }
  0x6c   : > { %1069 = vperm.xlu1 %2236, %v1035_v27  }
  0x70   : > { %1483 = vperm.xlu1 %2236, %v1480_v28  }
  0x74   : > { %1786 = vperm.xlu1 %2236, %v1675_v29  }
  0x9b   : > { %v2564_v36 = vpop.permute.xlu1 %406 }
  0xa0   : > { %v380_v37 = vpop.permute.xlu0 %379  ;;  %v2617_v0 = vpop.permute.xlu1 %578 }
  0xa1   : > { %v387_v44 = vrot.slane %v380_v37, %v386_v35 }
  0xa3   : > { %v2598_v55 = vmul.f32 %v387_v44, %v374_v38  ;;  %v2600_v56 = vmul.f32 %v387_v44, %v375_v39 }
  0xa5   : > { %3554 = vst [vmem:[#allocation9_spill] sm:$0xff] %v2598_v55  ;;  %3555 = vst [vmem:[#allocation10_spill] sm:$0xff] %v2600_v56  ;;  %v460_v61 = vrot.slane %v2600_v56, %v2572_v41  ;;  %v468_v62 = vrot.slane %v2600_v56, %v451_v42  ;;  %v628_v63 = vrot.slane %v2600_v56, %v2576_v43  ;;  %v2619_v1 = vpop.permute.xlu0 %582  ;;  %v2667_v22 = vpop.permute.xlu1 %411 }
  0xa6   : > { %v448_v4 = vrot.slane %v2598_v55, %v3510_v48  ;;  %v616_v5 = vrot.slane %v2598_v55, %v3509_v49  ;;  %v456_v6 = vrot.slane %v2598_v55, %v3508_v50  ;;  %v624_v7 = vrot.slane %v2598_v55, %v3507_v51 }
  0xa7   : > { %v2636_v8 = vrot.slane %v460_v61, %v2572_v41  ;;  %v2639_v9 = vrot.slane %v468_v62, %v2572_v41  ;;  %v636_v10 = vrot.slane %v2600_v56, %v619_v54  ;;  %v444_v17 = vrot.slane %v2598_v55, %v2572_v41 }
  0xa8   : > { %v2645_v12 = vrot.slane %v448_v4, %v2572_v41  ;;  %v2648_v13 = vrot.slane %v616_v5, %v2576_v43  ;;  %v2651_v14 = vrot.slane %v456_v6, %v2572_v41  ;;  %v2654_v15 = vrot.slane %v624_v7, %v2576_v43 }
  0xa9   : > { %v2656_v16 = vpop.permute.xlu0 %586  ;;  %v612_v18 = vrot.slane %v2598_v55, %v2576_v43  ;;  %v452_v19 = vrot.slane %v2598_v55, %v451_v42  ;;  %v620_v20 = vrot.slane %v2598_v55, %v619_v54  ;;  %v2665_v21 = vrot.slane %v628_v63, %v2576_v43  ;;  %v2704_v42 = vpop.permute.xlu1 %416 }
  0xaa   : > { %3560 = vst [vmem:[#allocation15_spill] sm:$0xff] %v2656_v16  ;;  %v522_v23 = vmul.f32 %v2645_v12, %v2564_v36  ;;  %v690_v24 = vmul.f32 %v2648_v13, %v2619_v1  ;;  %v524_v25 = vmul.f32 %v2651_v14, %v2564_v36  ;;  %v2676_v26 = vrot.slane %v636_v10, %v2576_v43 }
  0xab   : > { %v692_v27 = vmul.f32 %v2654_v15, %v2619_v1  ;;  %v2681_v28 = vrot.slane %v444_v17, %v2572_v41  ;;  %v2684_v29 = vrot.slane %v612_v18, %v2576_v43  ;;  %v682_v30 = vmul.f32 %v2648_v13, %v2617_v0  ;;  %3562 = vst [vmem:[#allocation17_spill] sm:$0xff] %v2704_v42 }
  0xac   : > { %v684_v31 = vmul.f32 %v2654_v15, %v2617_v0  ;;  %v2691_v32 = vrot.slane %v452_v19, %v2572_v41  ;;  %v2694_v33 = vrot.slane %v620_v20, %v2576_v43  ;;  %v754_v37 = vadd.f32 %v690_v24, %v522_v23 }
  0xad   : > { %v2696_v35 = vpop.permute.xlu0 %598  ;;  %v521_v38 = vmul.f32 %v2681_v28, %v2564_v36  ;;  %v689_v39 = vmul.f32 %v2684_v29, %v2619_v1  ;;  %v530_v40 = vmul.f32 %v2645_v12, %v2667_v22  ;;  %v756_v44 = vadd.f32 %v692_v27, %v524_v25 }
  0xae   : > { %3561 = vst [vmem:[#allocation16_spill] sm:$0xff] %v2696_v35  ;;  %v523_v45 = vmul.f32 %v2691_v32, %v2564_v36  ;;  %v691_v46 = vmul.f32 %v2694_v33, %v2619_v1  ;;  %v698_v47 = vmul.f32 %v2648_v13, %v2656_v16  ;;  %v681_v52 = vmul.f32 %v2684_v29, %v2617_v0  ;;  %v2742_v23 = vpop.permute.xlu1 %590 }
  0xaf   : > { %v753_v53 = vadd.f32 %v689_v39, %v521_v38  ;;  %v683_v54 = vmul.f32 %v2694_v33, %v2617_v0  ;;  %v532_v59 = vmul.f32 %v2651_v14, %v2667_v22  ;;  %v538_v60 = vmul.f32 %v2645_v12, %v2704_v42  ;;  %3564 = vst [vmem:[#allocation19_spill] sm:$0xff] %v2742_v23 }
  0xb0   : > { %v540_v61 = vmul.f32 %v2651_v14, %v2704_v42  ;;  %v700_v62 = vmul.f32 %v2654_v15, %v2656_v16  ;;  %v529_v63 = vmul.f32 %v2681_v28, %v2667_v22  ;;  %v755_v5 = vadd.f32 %v691_v46, %v523_v45 }
  0xb1   : > { %v2726_v4 = vpop.permute.xlu0 %606  ;;  %v2728_v6 = vadd.f32 %v698_v47, %v530_v40  ;;  %v697_v7 = vmul.f32 %v2684_v29, %v2656_v16  ;;  %v531_v10 = vmul.f32 %v2691_v32, %v2667_v22  ;;  %v537_v18 = vmul.f32 %v2681_v28, %v2704_v42 }
  0xb2   : > { %3563 = vst [vmem:[#allocation18_spill] sm:$0xff] %v2726_v4  ;;  %v2734_v17 = vadd.f32 %v700_v62, %v532_v59  ;;  %v539_v19 = vmul.f32 %v2691_v32, %v2704_v42  ;;  %v699_v20 = vmul.f32 %v2694_v33, %v2656_v16  ;;  %v2748_v25 = vmul.f32 %v2648_v13, %v2696_v35 }
  0xb3   : > { %v2744_v24 = vadd.f32 %v697_v7, %v529_v63  ;;  %v2752_v27 = vmul.f32 %v2654_v15, %v2696_v35  ;;  %v2756_v38 = vmul.f32 %v2684_v29, %v2696_v35  ;;  %v706_v39 = vmul.f32 %v2648_v13, %v2742_v23 }
  0xb4   : > { %v708_v40 = vmul.f32 %v2654_v15, %v2742_v23  ;;  %v705_v45 = vmul.f32 %v2684_v29, %v2742_v23  ;;  %v707_v46 = vmul.f32 %v2694_v33, %v2742_v23  ;;  %v2766_v47 = vadd.f32 %v699_v20, %v531_v10 }
  0xb5   : > { %v2770_v59 = vmul.f32 %v2694_v33, %v2696_v35  ;;  %v2774_v62 = vmul.f32 %v2648_v13, %v2726_v4  ;;  %v2778_v63 = vmul.f32 %v2654_v15, %v2726_v4  ;;  %v2782_v2 = vadd.f32 %v706_v39, %v538_v60  ;;  %v2802_v39 = vpop.permute.xlu1 %824 }
  0xb6   : > { %v2780_v7 = vpop.permute.xlu0 %401  ;;  %v2784_v51 = vadd.f32 %v708_v40, %v540_v61  ;;  %v2788_v10 = vmul.f32 %v2684_v29, %v2726_v4  ;;  %v2792_v20 = vmul.f32 %v2694_v33, %v2726_v4  ;;  %v2804_v40 = vadd.f32 %v705_v45, %v537_v18 }
  0xb7   : > { %v514_v50 = vmul.f32 %v2645_v12, %v2780_v7  ;;  %v516_v49 = vmul.f32 %v2651_v14, %v2780_v7  ;;  %v513_v60 = vmul.f32 %v2681_v28, %v2780_v7  ;;  %v515_v61 = vmul.f32 %v2691_v32, %v2780_v7 }
  0xb8   : > { %v2806_v48 = vadd.f32 %v707_v46, %v539_v19  ;;  %v3565_v55 = vsub.s32 2, %v2556_v34  ;;  %v632_v4 = vrot.slane %v2600_v56, %v3566_v3  ;;  %v866_v35 = vadd.f32 %v2802_v39, %v754_v37 }
  0xb9   : > { %v746_v58 = vadd.f32 %v682_v30, %v514_v50  ;;  %v748_v57 = vadd.f32 %v684_v31, %v516_v49  ;;  %v868_v23 = vadd.f32 %v2802_v39, %v756_v44  ;;  %v745_v18 = vadd.f32 %v681_v52, %v513_v60  ;;  %v2828_v31 = vpop.permute.xlu1 %421 }
  0xba   : > { %v464_v11 = vrot.slane %v2600_v56, %v3565_v55  ;;  %v2816_v16 = vpop.permute.xlu0 %819  ;;  %v865_v19 = vadd.f32 %v2802_v39, %v753_v53  ;;  %v747_v45 = vadd.f32 %v683_v54, %v515_v61  ;;  %v867_v46 = vadd.f32 %v2802_v39, %v755_v5  ;;  %3569 = vst [vmem:[#allocation20_spill] sm:$0xff] %v2828_v31 }
  0xbb   : > { %v858_v55 = vadd.f32 %v2816_v16, %v746_v58  ;;  %v860_v42 = vadd.f32 %v2816_v16, %v748_v57  ;;  %v3567_v3 = vsub.s32 6, %v2556_v34  ;;  %v3568_v49 = vsub.s32 7, %v2556_v34 }
  0xbc   : > { %v930_v37 = vmax.f32 %v866_v35, 0.0  ;;  %v932_v44 = vmax.f32 %v868_v23, 0.0  ;;  %v857_v52 = vadd.f32 %v2816_v16, %v745_v18  ;;  %v859_v53 = vadd.f32 %v2816_v16, %v747_v45 }
  0xbd   : > { %v472_v50 = vrot.slane %v2600_v56, %v3567_v3  ;;  %v640_v30 = vrot.slane %v2600_v56, %v3568_v49  ;;  %v922_v54 = vmax.f32 %v858_v55, 0.0  ;;  %v924_v58 = vmax.f32 %v860_v42, 0.0 }
  0xbe   : > { %v929_v5 = vmax.f32 %v865_v19, 0.0  ;;  %v931_v57 = vmax.f32 %v867_v46, 0.0  ;;  %v2832_v60 = vpop.permute.xlu0 %426  ;;  %v921_v61 = vmax.f32 %v857_v52, 0.0  ;;  %v923_v3 = vmax.f32 %v859_v53, 0.0  ;;  %v2846_v52 = vpop.permute.xlu1 %594 }
  0xbf   : > { %3570 = vst [vmem:[#allocation21_spill] sm:$0xff] %v2832_v60  ;;  %v546_v34 = vmul.f32 %v2645_v12, %v2828_v31  ;;  %v548_v49 = vmul.f32 %v2651_v14, %v2828_v31  ;;  %v998_v35 = vpack.c.bf16 %v930_v37, %v922_v54  ;;  %v1000_v23 = vpack.c.bf16 %v932_v44, %v924_v58 }
  0xc0   : > { %v554_v18 = vmul.f32 %v2645_v12, %v2832_v60  ;;  %v556_v42 = vmul.f32 %v2651_v14, %v2832_v60  ;;  %v997_v19 = vpack.c.bf16 %v929_v5, %v921_v61  ;;  %v999_v45 = vpack.c.bf16 %v931_v57, %v923_v3  ;;  %3571 = vst [vmem:[#allocation22_spill] sm:$0xff] %v2846_v52 }
  0xc1   : > { %v553_v46 = vmul.f32 %v2681_v28, %v2832_v60  ;;  %v555_v55 = vmul.f32 %v2691_v32, %v2832_v60  ;;  %1090 = vmatprep.subr.bf16.mxu0 %v998_v35  ;;  %1163 = vmatprep.subr.bf16.mxu1 %v1000_v23  ;;  %v545_v37 = vmul.f32 %v2681_v28, %v2828_v31 }
  0xc2   : > { %v547_v44 = vmul.f32 %v2691_v32, %v2828_v31  ;;  %v2853_v53 = vrot.slane %v464_v11, %v2572_v41  ;;  %v2855_v54 = vpop.permute.xlu0 %431  ;;  %1091 = vmatpush1.bf16.msra.mxu0 %v997_v19  ;;  %1164 = vmatpush1.bf16.msra.mxu1 %v999_v45  ;;  %v714_v58 = vmul.f32 %v2648_v13, %v2846_v52 }
  0xc3   : > { %v716_v5 = vmul.f32 %v2654_v15, %v2846_v52  ;;  %v713_v57 = vmul.f32 %v2684_v29, %v2846_v52  ;;  %v2864_v61 = vadd.f32 %v2748_v25, %v554_v18  ;;  %v2867_v3 = vadd.f32 %v2752_v27, %v556_v42 }
  0xc4   : > { %3572 = vst [vmem:[#allocation23_spill] sm:$0xff] %v2853_v53  ;;  %v2870_v11 = vadd.f32 %v2756_v38, %v553_v46  ;;  %v715_v35 = vmul.f32 %v2694_v33, %v2846_v52  ;;  %v2874_v23 = vadd.f32 %v714_v58, %v546_v34  ;;  %v2879_v45 = vadd.f32 %v2770_v59, %v555_v55 }
  0xc5   : > { %v2876_v19 = vadd.f32 %v716_v5, %v548_v49  ;;  %v2883_v25 = vmul.f32 %v2645_v12, %v2855_v54  ;;  %v2885_v18 = vadd.f32 %v713_v57, %v545_v37  ;;  %v2891_v38 = vmul.f32 %v2651_v14, %v2855_v54  ;;  %v2895_v49 = vpop.permute.xlu1 %829 }
  0xc6   : > { %v2887_v27 = vadd.f32 %v715_v35, %v547_v44  ;;  %v518_v34 = vmul.f32 %v2853_v53, %v2780_v7  ;;  %3573 = vst [vmem:[#allocation24_spill] sm:$0xff] %v2895_v49  ;;  %v526_v59 = vmul.f32 %v2853_v53, %v2564_v36  ;;  %v2900_v42 = vrot.slane %v632_v4, %v2576_v43 }
  0xc7   : > { %v2903_v46 = vrot.slane %v472_v50, %v2572_v41  ;;  %v2906_v55 = vrot.slane %v640_v30, %v2576_v43  ;;  %v874_v37 = vadd.f32 %v2895_v49, %v2728_v6  ;;  %v876_v44 = vadd.f32 %v2895_v49, %v2734_v17 }
  0xc8   : > { %3574 = vst [vmem:[#allocation25_spill] sm:$0xff] %v2900_v42  ;;  %v873_v58 = vadd.f32 %v2895_v49, %v2744_v24  ;;  %v875_v5 = vadd.f32 %v2895_v49, %v2766_v47  ;;  %v686_v4 = vmul.f32 %v2900_v42, %v2617_v0  ;;  %v694_v41 = vmul.f32 %v2900_v42, %v2619_v1 }
  0xc9   : > { %3575 = vst [vmem:[#allocation26_spill] sm:$0xff] %v2903_v46  ;;  %3576 = vst [vmem:[#allocation27_spill] sm:$0xff] %v2906_v55  ;;  %v520_v43 = vmul.f32 %v2903_v46, %v2780_v7  ;;  %v528_v6 = vmul.f32 %v2903_v46, %v2564_v36  ;;  %v938_v50 = vmax.f32 %v874_v37, 0.0  ;;  %v940_v17 = vmax.f32 %v876_v44, 0.0  ;;  %v2924_v24 = vpop.permute.xlu1 %834 }
  0xca   : > { %v937_v30 = vmax.f32 %v873_v58, 0.0  ;;  %v939_v57 = vmax.f32 %v875_v5, 0.0  ;;  %3577 = vst [vmem:[#allocation28_spill] sm:$0xff] %v2924_v24  ;;  %v750_v35 = vadd.f32 %v686_v4, %v518_v34  ;;  %v758_v47 = vadd.f32 %v694_v41, %v526_v59 }
  0xcb   : > { %v688_v56 = vmul.f32 %v2906_v55, %v2617_v0  ;;  %v696_v52 = vmul.f32 %v2906_v55, %v2619_v1  ;;  %v882_v60 = vadd.f32 %v2924_v24, %v2782_v2  ;;  %v884_v31 = vadd.f32 %v2924_v24, %v2784_v51 }
  0xcc   : > { %v881_v37 = vadd.f32 %v2924_v24, %v2804_v40  ;;  %v883_v44 = vadd.f32 %v2924_v24, %v2806_v48  ;;  %v862_v34 = vadd.f32 %v2816_v16, %v750_v35  ;;  %v870_v59 = vadd.f32 %v2802_v39, %v758_v47 }
  0xcd   : > { %v752_v58 = vadd.f32 %v688_v56, %v520_v43  ;;  %v760_v5 = vadd.f32 %v696_v52, %v528_v6  ;;  %v946_v4 = vmax.f32 %v882_v60, 0.0  ;;  %v948_v41 = vmax.f32 %v884_v31, 0.0  ;;  %v2940_v2 = vpop.permute.xlu1 %436 }
  0xce   : > { %v945_v55 = vmax.f32 %v881_v37, 0.0  ;;  %v947_v49 = vmax.f32 %v883_v44, 0.0  ;;  %v926_v46 = vmax.f32 %v862_v34, 0.0  ;;  %v934_v51 = vmax.f32 %v870_v59, 0.0  ;;  %v2994_v34 = vpop.permute.xlu0 %849 }
  0xcf   : > { %v864_v42 = vadd.f32 %v2816_v16, %v752_v58  ;;  %v872_v40 = vadd.f32 %v2802_v39, %v760_v5  ;;  %v1006_v53 = vpack.c.bf16 %v946_v4, %v938_v50  ;;  %v1008_v48 = vpack.c.bf16 %v948_v41, %v940_v17 }
  0xd0   : > { %v1005_v24 = vpack.c.bf16 %v945_v55, %v937_v30  ;;  %v1007_v35 = vpack.c.bf16 %v947_v49, %v939_v57  ;;  %v570_v56 = vmul.f32 %v2645_v12, %v2940_v2  ;;  %v572_v31 = vmul.f32 %v2651_v14, %v2940_v2 }
  0xd1   : > { %v569_v60 = vmul.f32 %v2681_v28, %v2940_v2  ;;  %v571_v52 = vmul.f32 %v2691_v32, %v2940_v2  ;;  %1092 = vmatprep.subr.bf16.mxu0 %v1006_v53  ;;  %1165 = vmatprep.subr.bf16.mxu1 %v1008_v48  ;;  %v561_v43 = vmul.f32 %v2681_v28, %v2855_v54  ;;  %v928_v55 = vmax.f32 %v864_v42, 0.0  ;;  %v2966_v17 = vpop.permute.xlu1 %602 }
  0xd2   : > { %v563_v49 = vmul.f32 %v2691_v32, %v2855_v54  ;;  %v517_v12 = vmul.f32 %v2636_v8, %v2780_v7  ;;  %1093 = vmatpush1.bf16.msra.mxu0 %v1005_v24  ;;  %1166 = vmatpush1.bf16.msra.mxu1 %v1007_v35  ;;  %v2959_v14 = vadd.f32 %v2774_v62, %v570_v56  ;;  %v936_v50 = vmax.f32 %v872_v40, 0.0 }
  0xd3   : > { %v2962_v6 = vadd.f32 %v2778_v63, %v572_v31  ;;  %v2964_v53 = vpack.c.bf16 %v934_v51, %v926_v46  ;;  %v2969_v28 = vadd.f32 %v2788_v10, %v569_v60  ;;  %v2972_v32 = vadd.f32 %v2792_v20, %v571_v52 }
  0xd4   : > { %v525_v42 = vmul.f32 %v2636_v8, %v2564_v36  ;;  %v685_v62 = vmul.f32 %v2665_v21, %v2617_v0  ;;  %v730_v63 = vmul.f32 %v2648_v13, %v2966_v17  ;;  %v732_v46 = vmul.f32 %v2654_v15, %v2966_v17 }
  0xd5   : > { %v729_v30 = vmul.f32 %v2684_v29, %v2966_v17  ;;  %v731_v10 = vmul.f32 %v2694_v33, %v2966_v17  ;;  %v2986_v20 = vpack.c.bf16 %v936_v50, %v928_v55  ;;  %v693_v57 = vmul.f32 %v2665_v21, %v2619_v1  ;;  %v3001_v5 = vpop.permute.xlu1 %839 }
  0xd6   : > { %v749_v24 = vadd.f32 %v685_v62, %v517_v12  ;;  %v519_v47 = vmul.f32 %v2639_v9, %v2780_v7  ;;  %v794_v13 = vadd.f32 %v730_v63, %v2883_v25  ;;  %v796_v37 = vadd.f32 %v732_v46, %v2891_v38  ;;  %v3578_v46 = vld [vmem:[#allocation23_spill] sm:$0xff] }
  0xd7   : > { %v793_v15 = vadd.f32 %v729_v30, %v561_v43  ;;  %v795_v44 = vadd.f32 %v731_v10, %v563_v49  ;;  %v757_v29 = vadd.f32 %v693_v57, %v525_v42  ;;  %v527_v59 = vmul.f32 %v2639_v9, %v2564_v36 }
  0xd8   : > { %v861_v33 = vadd.f32 %v2816_v16, %v749_v24  ;;  %v687_v58 = vmul.f32 %v2676_v26, %v2617_v0  ;;  %v3004_v7 = vadd.f32 %v2994_v34, %v794_v13  ;;  %v3007_v25 = vadd.f32 %v2994_v34, %v796_v37  ;;  %v3579_v37 = vld [vmem:[#allocation17_spill] sm:$0xff] }
  0xd9   : > { %v3010_v38 = vadd.f32 %v2994_v34, %v793_v15  ;;  %v695_v4 = vmul.f32 %v2676_v26, %v2619_v1  ;;  %v890_v36 = vadd.f32 %v3001_v5, %v2874_v23  ;;  %v892_v0 = vadd.f32 %v3001_v5, %v2876_v19  ;;  %v3026_v52 = vpop.permute.xlu1 %844 }
  0xda   : > { %v889_v41 = vadd.f32 %v3001_v5, %v2885_v18  ;;  %v891_v51 = vadd.f32 %v3001_v5, %v2887_v27  ;;  %v970_v40 = vmax.f32 %v3004_v7, 0.0  ;;  %v972_v48 = vmax.f32 %v3007_v25, 0.0 }
  0xdb   : > { %v969_v35 = vmax.f32 %v3010_v38, 0.0  ;;  %v907_v1 = vadd.f32 %v2994_v34, %v795_v44  ;;  %v954_v56 = vmax.f32 %v890_v36, 0.0  ;;  %v956_v31 = vmax.f32 %v892_v0, 0.0  ;;  %v3580_v38 = vld [vmem:[#allocation15_spill] sm:$0xff] }
  0xdc   : > { %v953_v23 = vmax.f32 %v889_v41, 0.0  ;;  %v955_v60 = vmax.f32 %v891_v51, 0.0  ;;  %v869_v19 = vadd.f32 %v2802_v39, %v757_v29  ;;  %v925_v18 = vmax.f32 %v861_v33, 0.0  ;;  %v3582_v0 = vld [vmem:[#allocation19_spill] sm:$0xff] }
  0xdd   : > { %v751_v43 = vadd.f32 %v687_v58, %v519_v47  ;;  %v759_v49 = vadd.f32 %v695_v4, %v527_v59  ;;  %v898_v27 = vadd.f32 %v3026_v52, %v2864_v61  ;;  %v900_v55 = vadd.f32 %v3026_v52, %v2867_v3  ;;  %v3041_v47 = vpop.permute.xlu1 %854  ;;  %v3581_v4 = vld [vmem:[#allocation25_spill] sm:$0xff] }
  0xde   : > { %v897_v12 = vadd.f32 %v3026_v52, %v2870_v11  ;;  %v899_v50 = vadd.f32 %v3026_v52, %v2879_v45  ;;  %v933_v42 = vmax.f32 %v869_v19, 0.0  ;;  %v534_v30 = vmul.f32 %v3578_v46, %v2667_v22 }
  0xdf   : > { %v863_v62 = vadd.f32 %v2816_v16, %v751_v43  ;;  %v871_v63 = vadd.f32 %v2802_v39, %v759_v49  ;;  %v962_v10 = vmax.f32 %v898_v27, 0.0  ;;  %v964_v57 = vmax.f32 %v900_v55, 0.0  ;;  %v3584_v49 = vld [vmem:[#allocation24_spill] sm:$0xff] }
  0xe0   : > { %v961_v61 = vmax.f32 %v897_v12, 0.0  ;;  %v963_v24 = vmax.f32 %v899_v50, 0.0  ;;  %v1001_v3 = vpack.c.bf16 %v933_v42, %v925_v18  ;;  %v542_v45 = vmul.f32 %v3578_v46, %v3579_v37  ;;  %v3585_v55 = vld [vmem:[#allocation28_spill] sm:$0xff]  ;;  %v3586_v50 = vld [vmem:[#allocation27_spill] sm:$0xff] }
  0xe1   : > { %v927_v13 = vmax.f32 %v863_v62, 0.0  ;;  %v935_v11 = vmax.f32 %v871_v63, 0.0  ;;  %v1014_v15 = vpack.c.bf16 %v962_v10, %v954_v56  ;;  %v1016_v44 = vpack.c.bf16 %v964_v57, %v956_v31 }
  0xe2   : > { %v1013_v16 = vpack.c.bf16 %v961_v61, %v953_v23  ;;  %v1015_v29 = vpack.c.bf16 %v963_v24, %v955_v60  ;;  %v914_v39 = vadd.f32 %v3041_v47, %v2959_v14  ;;  %v916_v33 = vadd.f32 %v3041_v47, %v2962_v6 }
  0xe3   : > { %v913_v59 = vadd.f32 %v3041_v47, %v2969_v28  ;;  %v915_v58 = vadd.f32 %v3041_v47, %v2972_v32  ;;  %1094 = vmatprep.subr.bf16.mxu0 %v1014_v15  ;;  %1167 = vmatprep.subr.bf16.mxu1 %v1016_v44  ;;  %v971_v7 = vmax.f32 %v907_v1, 0.0  ;;  %v1003_v25 = vpack.c.bf16 %v935_v11, %v927_v13  ;;  %v3583_v32 = vld [vmem:[#allocation26_spill] sm:$0xff] }
  0xe4   : > { %v702_v36 = vmul.f32 %v3581_v4, %v3580_v38  ;;  %v710_v41 = vmul.f32 %v3581_v4, %v3582_v0  ;;  %1095 = vmatpush1.bf16.msra.mxu0 %v1013_v16  ;;  %1168 = vmatpush1.bf16.msra.mxu1 %v1015_v29  ;;  %v978_v14 = vmax.f32 %v914_v39, 0.0  ;;  %v980_v6 = vmax.f32 %v916_v33, 0.0  ;;  %v3587_v16 = vld [vmem:[#allocation11_spill] sm:$0xff] }
  0xe5   : > { %v977_v51 = vmax.f32 %v913_v59, 0.0  ;;  %v979_v56 = vmax.f32 %v915_v58, 0.0  ;;  %v536_v23 = vmul.f32 %v3583_v32, %v2667_v22  ;;  %v544_v1 = vmul.f32 %v3583_v32, %v3579_v37 }
  0xe6   : > { %v766_v28 = vadd.f32 %v702_v36, %v534_v30  ;;  %v774_v31 = vadd.f32 %v710_v41, %v542_v45  ;;  %v1022_v60 = vpack.c.bf16 %v978_v14, %v970_v40  ;;  %v1024_v19 = vpack.c.bf16 %v980_v6, %v972_v48  ;;  %v3589_v41 = vld [vmem:[#allocation21_spill] sm:$0xff] }
  0xe7   : > { %v1021_v18 = vpack.c.bf16 %v977_v51, %v969_v35  ;;  %v1023_v43 = vpack.c.bf16 %v979_v56, %v971_v7  ;;  %v704_v42 = vmul.f32 %v3586_v50, %v3580_v38  ;;  %v712_v62 = vmul.f32 %v3586_v50, %v3582_v0  ;;  %v3592_v56 = vld [vmem:[#allocation16_spill] sm:$0xff] }
  0xe8   : > { %v878_v27 = vadd.f32 %v3584_v49, %v766_v28  ;;  %v886_v12 = vadd.f32 %v3585_v55, %v774_v31  ;;  %1096 = vmatprep.subr.bf16.mxu0 %v1022_v60  ;;  %1169 = vmatprep.subr.bf16.mxu1 %v1024_v19  ;;  %v533_v63 = vmul.f32 %v2636_v8, %v2667_v22  ;;  %v3590_v6 = vmov 0  }
  0xe9   : > { %v541_v40 = vmul.f32 %v2636_v8, %v3579_v37  ;;  %v701_v48 = vmul.f32 %v2665_v21, %v3580_v38  ;;  %1097 = vmatpush1.bf16.msra.mxu0 %v1021_v18  ;;  %1170 = vmatpush1.bf16.msra.mxu1 %v1023_v43  ;;  %v768_v10 = vadd.f32 %v704_v42, %v536_v23 }
  0xea   : > { %v942_v35 = vmax.f32 %v878_v27, 0.0  ;;  %v950_v30 = vmax.f32 %v886_v12, 0.0  ;;  %v776_v57 = vadd.f32 %v712_v62, %v544_v1  ;;  %1236 = vmatprep.subr.bf16.mxu0 %v2964_v53  ;;  %1309 = vmatprep.subr.bf16.mxu1 %v2986_v20  ;;  %v709_v61 = vmul.f32 %v2665_v21, %v3582_v0 }
  0xeb   : > { %v765_v24 = vadd.f32 %v701_v48, %v533_v63  ;;  %v535_v13 = vmul.f32 %v2639_v9, %v2667_v22  ;;  %v880_v45 = vadd.f32 %v3584_v49, %v768_v10  ;;  %v543_v44 = vmul.f32 %v2639_v9, %v3579_v37  ;;  %v3588_v37 = vld [vmem:[#allocation20_spill] sm:$0xff] }
  0xec   : > { %v1010_v11 = vpack.c.bf16 %v950_v30, %v942_v35  ;;  %v888_v15 = vadd.f32 %v3585_v55, %v776_v57  ;;  %2146 = vmatmul.mubr.msk.bf16.vlgmr.msra.gmra.mrb[0].mxu0 %vm1077_vm0, %v3587_v16  ;;  %2150 = vmatmul.mubr.msk.bf16.vlgmr.msra.gmra.mrb[0].mxu1 %vm1077_vm0, %v3587_v16  ;;  %v773_v53 = vadd.f32 %v709_v61, %v541_v40  ;;  %v3593_v35 = vld [vmem:[#allocation12_spill] sm:$0xff] }
  0xed   : > { %v877_v20 = vadd.f32 %v3584_v49, %v765_v24  ;;  %v703_v22 = vmul.f32 %v2676_v26, %v3580_v38  ;;  %1237 = vmatpush1.bf16.msra.mxu0 %v1001_v3  ;;  %1310 = vmatpush1.bf16.msra.mxu1 %v1003_v25  ;;  %v944_v29 = vmax.f32 %v880_v45, 0.0  ;;  %v711_v33 = vmul.f32 %v2676_v26, %v3582_v0  ;;  %v3591_v38 = vld [vmem:[#allocation22_spill] sm:$0xff] }
  0xee   : > { %v952_v39 = vmax.f32 %v888_v15, 0.0  ;;  %v550_v59 = vmul.f32 %v3578_v46, %v3588_v37  ;;  %1238 = vmatprep.subr.bf16.mxu0 %v1010_v11  ;;  %v885_v58 = vadd.f32 %v3585_v55, %v773_v53  ;;  %v558_v14 = vmul.f32 %v3578_v46, %v3589_v41  ;;  %1132 = vmatprep.mubr.bf16.mxu0 %v3590_v6 }
  0xef   : > { %v941_v7 = vmax.f32 %v877_v20, 0.0  ;;  %v767_v36 = vadd.f32 %v703_v22, %v535_v13  ;;  %v775_v25 = vadd.f32 %v711_v33, %v543_v44  ;;  %v718_v51 = vmul.f32 %v3581_v4, %v3591_v38  ;;  %1205 = vmatprep.mubr.bf16.mxu1 %v3590_v6 }
  0xf0   : > { %v1012_v3 = vpack.c.bf16 %v952_v39, %v944_v29  ;;  %v726_v0 = vmul.f32 %v3581_v4, %v3592_v56  ;;  %v949_v28 = vmax.f32 %v885_v58, 0.0  ;;  %v552_v23 = vmul.f32 %v3583_v32, %v3588_v37 }
  0xf1   : > { %v879_v31 = vadd.f32 %v3584_v49, %v767_v36  ;;  %v560_v1 = vmul.f32 %v3583_v32, %v3589_v41  ;;  %v887_v60 = vadd.f32 %v3585_v55, %v775_v25  ;;  %v782_v19 = vadd.f32 %v718_v51, %v550_v59 }
  0xf2   : > { %1311 = vmatprep.subr.bf16.mxu1 %v1012_v3  ;;  %v790_v18 = vadd.f32 %v726_v0, %v558_v14  ;;  %v720_v43 = vmul.f32 %v3586_v50, %v3591_v38  ;;  %v1009_v27 = vpack.c.bf16 %v949_v28, %v941_v7  ;;  %v728_v42 = vmul.f32 %v3586_v50, %v3592_v56  ;;  %v3594_v0 = vld [vmem:[#allocation18_spill] sm:$0xff] }
  0xf3   : > { %v943_v12 = vmax.f32 %v879_v31, 0.0  ;;  %v549_v49 = vmul.f32 %v2636_v8, %v3588_v37  ;;  %v951_v62 = vmax.f32 %v887_v60, 0.0  ;;  %v894_v63 = vadd.f32 %v3001_v5, %v782_v19  ;;  %v3595_v19 = vld [vmem:[#allocation13_spill] sm:$0xff] }
  0xf4   : > { %v902_v40 = vadd.f32 %v3026_v52, %v790_v18  ;;  %v784_v48 = vadd.f32 %v720_v43, %v552_v23  ;;  %1239 = vmatpush1.bf16.msra.mxu0 %v1009_v27  ;;  %v792_v55 = vadd.f32 %v728_v42, %v560_v1  ;;  %2151 = vmatmul.mubr.msk.bf16.gmra.mrb[4].mxu1 %vm1077_vm0, %v3593_v35 }
  0xf5   : > { %v557_v30 = vmul.f32 %v2636_v8, %v3589_v41  ;;  %v717_v10 = vmul.f32 %v2665_v21, %v3591_v38  ;;  %v1011_v57 = vpack.c.bf16 %v951_v62, %v943_v12  ;;  %v958_v61 = vmax.f32 %v894_v63, 0.0  ;;  %2147 = vmatmul.mubr.msk.bf16.gmra.mrb[4].mxu0 %vm1077_vm0, %v3593_v35  ;;  %1215 = vmatprep.mubr.bf16.mxu1 %v3590_v6 }
  0xf6   : > { %v966_v24 = vmax.f32 %v902_v40, 0.0  ;;  %v896_v13 = vadd.f32 %v3001_v5, %v784_v48  ;;  %v904_v11 = vadd.f32 %v3026_v52, %v792_v55  ;;  %v725_v45 = vmul.f32 %v2665_v21, %v3592_v56  ;;  %1142 = vmatprep.mubr.bf16.mxu0 %v3590_v6 }
  0xf7   : > { %v781_v15 = vadd.f32 %v717_v10, %v549_v49  ;;  %v551_v44 = vmul.f32 %v2639_v9, %v3588_v37  ;;  %1312 = vmatpush1.bf16.msra.mxu1 %v1011_v57  ;;  %v559_v22 = vmul.f32 %v2639_v9, %v3589_v41  ;;  %v719_v29 = vmul.f32 %v2676_v26, %v3591_v38 }
  0xf8   : > { %v1018_v53 = vpack.c.bf16 %v966_v24, %v958_v61  ;;  %v960_v20 = vmax.f32 %v896_v13, 0.0  ;;  %v968_v39 = vmax.f32 %v904_v11, 0.0  ;;  %v789_v33 = vadd.f32 %v725_v45, %v557_v30 }
  0xf9   : > { %v893_v59 = vadd.f32 %v3001_v5, %v781_v15  ;;  %v727_v58 = vmul.f32 %v2676_v26, %v3592_v56  ;;  %v783_v37 = vadd.f32 %v719_v29, %v551_v44  ;;  %v566_v7 = vmul.f32 %v3578_v46, %v2855_v54 }
  0xfa   : > { %1240 = vmatprep.subr.bf16.mxu0 %v1018_v53  ;;  %v574_v36 = vmul.f32 %v3578_v46, %v2940_v2  ;;  %v734_v41 = vmul.f32 %v3581_v4, %v2966_v17  ;;  %v1020_v14 = vpack.c.bf16 %v968_v39, %v960_v20  ;;  %v901_v3 = vadd.f32 %v3026_v52, %v789_v33  ;;  %v3596_v20 = vld [vmem:[#allocation14_spill] sm:$0xff] }
  0xfb   : > { %v957_v25 = vmax.f32 %v893_v59, 0.0  ;;  %v791_v38 = vadd.f32 %v727_v58, %v559_v22  ;;  %v895_v51 = vadd.f32 %v3001_v5, %v783_v37  ;;  %v742_v56 = vmul.f32 %v3581_v4, %v3594_v0 }
  0xfc   : > { %v798_v28 = vadd.f32 %v734_v41, %v566_v7  ;;  %v568_v31 = vmul.f32 %v3583_v32, %v2855_v54  ;;  %1313 = vmatprep.subr.bf16.mxu1 %v1020_v14  ;;  %v965_v23 = vmax.f32 %v901_v3, 0.0  ;;  %v576_v1 = vmul.f32 %v3583_v32, %v2940_v2  ;;  %2152 = vmatmul.mubr.msk.bf16.gmra.mrb[8].mxu1 %vm1077_vm0, %v3595_v19 }
  0xfd   : > { %v903_v46 = vadd.f32 %v3026_v52, %v791_v38  ;;  %v736_v60 = vmul.f32 %v3586_v50, %v2966_v17  ;;  %v806_v5 = vadd.f32 %v742_v56, %v574_v36  ;;  %v744_v18 = vmul.f32 %v3586_v50, %v3594_v0  ;;  %2148 = vmatmul.mubr.msk.bf16.gmra.mrb[8].mxu0 %vm1077_vm0, %v3595_v19 }
  0xfe   : > { %v910_v4 = vadd.f32 %v2994_v34, %v798_v28  ;;  %1225 = vmatprep.mubr.bf16.mxu1 %v3590_v6  ;;  %v1017_v52 = vpack.c.bf16 %v965_v23, %v957_v25  ;;  %v959_v43 = vmax.f32 %v895_v51, 0.0  ;;  %1152 = vmatprep.mubr.bf16.mxu0 %v3590_v6  ;;  %v565_v49 = vmul.f32 %v2636_v8, %v2855_v54 }
  0xff   : > { %v967_v32 = vmax.f32 %v903_v46, 0.0  ;;  %v800_v27 = vadd.f32 %v736_v60, %v568_v31  ;;  %v918_v12 = vadd.f32 %v3041_v47, %v806_v5  ;;  %v808_v42 = vadd.f32 %v744_v18, %v576_v1 }
 0x100   : > { %v573_v50 = vmul.f32 %v2636_v8, %v2940_v2  ;;  %1241 = vmatpush1.bf16.msra.mxu0 %v1017_v52  ;;  %v733_v40 = vmul.f32 %v2665_v21, %v2966_v17  ;;  %v741_v48 = vmul.f32 %v2665_v21, %v3594_v0  ;;  %v974_v55 = vmax.f32 %v910_v4, 0.0 }
 0x101   : > { %v1019_v62 = vpack.c.bf16 %v967_v32, %v959_v43  ;;  %v912_v63 = vadd.f32 %v2994_v34, %v800_v27  ;;  %v982_v30 = vmax.f32 %v918_v12, 0.0  ;;  %v920_v10 = vadd.f32 %v3041_v47, %v808_v42 }
 0x102   : > { %v575_v57 = vmul.f32 %v2639_v9, %v2940_v2  ;;  %v797_v61 = vadd.f32 %v733_v40, %v565_v49  ;;  %v805_v8 = vadd.f32 %v741_v48, %v573_v50  ;;  %v567_v24 = vmul.f32 %v2639_v9, %v2855_v54 }
 0x103   : > { %1314 = vmatpush1.bf16.msra.mxu1 %v1019_v62  ;;  %v735_v13 = vmul.f32 %v2676_v26, %v2966_v17  ;;  %v1026_v11 = vpack.c.bf16 %v982_v30, %v974_v55  ;;  %v976_v45 = vmax.f32 %v912_v63, 0.0  ;;  %v984_v15 = vmax.f32 %v920_v10, 0.0 }
 0x104   : > { %v743_v21 = vmul.f32 %v2676_v26, %v3594_v0  ;;  %v909_v44 = vadd.f32 %v2994_v34, %v797_v61  ;;  %v917_v53 = vadd.f32 %v3041_v47, %v805_v8  ;;  %2153 = vmatmul.mubr.msk.bf16.gmra.mrb[12].mxu1 %vm1077_vm0, %v3596_v20 }
 0x105   : > { %v799_v2 = vadd.f32 %v735_v13, %v567_v24  ;;  %1242 = vmatprep.subr.bf16.mxu0 %v1026_v11  ;;  %v1028_v22 = vpack.c.bf16 %v984_v15, %v976_v45  ;;  %2149 = vmatmul.mubr.msk.bf16.gmra.mrb[12].mxu0 %vm1077_vm0, %v3596_v20 }
 0x106   : > { %v807_v9 = vadd.f32 %v743_v21, %v575_v57  ;;  %v973_v54 = vmax.f32 %v909_v44, 0.0  ;;  %v981_v17 = vmax.f32 %v917_v53, 0.0  ;;  %1268 = vmatprep.mubr.bf16.mxu0 %v3590_v6  ;;  %1341 = vmatprep.mubr.bf16.mxu1 %v3590_v6 }
 0x107   : > { %v911_v29 = vadd.f32 %v2994_v34, %v799_v2  ;;  %1315 = vmatprep.subr.bf16.mxu1 %v1028_v22  ;;  %v3219_v34 = vpop.permute.xlu0 %1044 }
 0x108   : > { %v919_v26 = vadd.f32 %v3041_v47, %v807_v9  ;;  %v1025_v39 = vpack.c.bf16 %v981_v17, %v973_v54  ;;  %v3221_v47 = vpop.permute.xlu1 %1039 }
 0x109   : > { %v975_v33 = vmax.f32 %v911_v29, 0.0 }
 0x10a   : > { %v983_v59 = vmax.f32 %v919_v26, 0.0  ;;  %1243 = vmatpush1.bf16.msra.mxu0 %v1025_v39 }
 0x10b   : > { %v3231_v43 = vpop.permute.xlu0 %1054 }
 0x10c   : > { %v1027_v58 = vpack.c.bf16 %v983_v59, %v975_v33  ;;  %v3233_v12 = vpop.permute.xlu1 %1049 }
 0x10d   : > { %2154 = vmatmul.mubr.msk.bf16.vlgmr.msra.gmra.mrb[16].mxu0 %vm1077_vm0, %v3587_v16 }
 0x10e   : > { %1316 = vmatpush1.bf16.msra.mxu1 %v1027_v58  ;;  %1278 = vmatprep.mubr.bf16.mxu0 %v3590_v6 }
 0x10f   : > { %v3243_v9 = vpop.permute.xlu0 %1064 }
 0x110   : > { %v3245_v26 = vpop.permute.xlu1 %1059 }
 0x111   : > { %2158 = vmatmul.mubr.msk.bf16.vlgmr.msra.gmra.mrb[16].mxu1 %vm1077_vm0, %v3587_v16 }
 0x112   : > { %1351 = vmatprep.mubr.bf16.mxu1 %v3590_v6 }
 0x115   : > { %2155 = vmatmul.mubr.msk.bf16.gmra.mrb[20].mxu0 %vm1077_vm0, %v3593_v35 }
 0x116   : > { %1288 = vmatprep.mubr.bf16.mxu0 %v3590_v6 }
 0x119   : > { %2159 = vmatmul.mubr.msk.bf16.gmra.mrb[20].mxu1 %vm1077_vm0, %v3593_v35 }
 0x11a   : > { %1361 = vmatprep.mubr.bf16.mxu1 %v3590_v6 }
 0x11d   : > { %2156 = vmatmul.mubr.msk.bf16.gmra.mrb[24].mxu0 %vm1077_vm0, %v3595_v19 }
 0x11e   : > { %1298 = vmatprep.mubr.bf16.mxu0 %v3590_v6 }
 0x121   : > { %2160 = vmatmul.mubr.msk.bf16.gmra.mrb[24].mxu1 %vm1077_vm0, %v3595_v19 }
 0x122   : > { %1371 = vmatprep.mubr.bf16.mxu1 %v3590_v6 }
 0x125   : > { %2157 = vmatmul.mubr.msk.bf16.gmra.mrb[28].mxu0 %vm1077_vm0, %v3596_v20 }
 0x126   : > { %1521 = vmatprep.mubr.bf16.mxu0 %v3590_v6 }
 0x129   : > { %2161 = vmatmul.mubr.msk.bf16.gmra.mrb[28].mxu1 %vm1077_vm0, %v3596_v20 }
 0x12a   : > { %1562 = vmatprep.mubr.bf16.mxu1 %v3590_v6 }
 0x1bf   : > { %v1124_v16 = vpop.f32.mrb[0].mxu0  ;;  %v1197_v35 = vpop.f32.mrb[0].mxu1 }
 0x1c0   : > { %v1125_v37 = vadd.f32 %v1124_v16, %v3221_v47  ;;  %v1198_v7 = vadd.f32 %v1197_v35, %v3221_v47  ;;  %v1126_v36 = vpop.f32.mrb[1].mxu0  ;;  %v1199_v41 = vpop.f32.mrb[1].mxu1 }
 0x1c1   : > { %v1127_v14 = vadd.f32 %v1126_v36, %v3221_v47  ;;  %v1200_v3 = vadd.f32 %v1199_v41, %v3221_v47  ;;  %v1128_v25 = vpop.f32.mrb[2].mxu0  ;;  %v1201_v38 = vpop.f32.mrb[2].mxu1 }
 0x1c2   : > { %v1129_v51 = vadd.f32 %v1128_v25, %v3219_v34  ;;  %v1202_v0 = vadd.f32 %v1201_v38, %v3219_v34  ;;  %v1130_v56 = vpop.f32.mrb[3].mxu0  ;;  %v1203_v28 = vpop.f32.mrb[3].mxu1  ;;  %v1382_v46 = vmax.f32 %v1125_v37, 0.0  ;;  %v1384_v1 = vmax.f32 %v1198_v7, 0.0 }
 0x1c3   : > { %v1131_v31 = vadd.f32 %v1130_v56, %v3219_v34  ;;  %v1204_v23 = vadd.f32 %v1203_v28, %v3219_v34  ;;  %v1383_v5 = vmax.f32 %v1127_v14, 0.0  ;;  %v1385_v4 = vmax.f32 %v1200_v3, 0.0 }
 0x1c4   : > { %v1390_v60 = vmax.f32 %v1129_v51, 0.0  ;;  %v1392_v19 = vmax.f32 %v1202_v0, 0.0 }
 0x1c5   : > { %v1391_v18 = vmax.f32 %v1131_v31, 0.0  ;;  %v1393_v52 = vmax.f32 %v1204_v23, 0.0 }
 0x1c6   : > { %v1448_v32 = vpack.c.bf16 %v1390_v60, %v1382_v46  ;;  %v1450_v27 = vpack.c.bf16 %v1392_v19, %v1384_v1 }
 0x1c7   : > { %v1449_v42 = vpack.c.bf16 %v1391_v18, %v1383_v5  ;;  %v1451_v49 = vpack.c.bf16 %v1393_v52, %v1385_v4  ;;  %v1207_v50 = vpop.f32.mrb[4].mxu1  ;;  %v3255_v4 = vpop.permute.xlu0 %1074 }
 0x1c8   : > { %v1134_v62 = vpop.f32.mrb[4].mxu0  ;;  %v1208_v63 = vadd.f32 %v1207_v50, %v3233_v12  ;;  %v1209_v40 = vpop.f32.mrb[5].mxu1 }
 0x1c9   : > { %v1135_v48 = vadd.f32 %v1134_v62, %v3233_v12  ;;  %v1136_v55 = vpop.f32.mrb[5].mxu0  ;;  %v1210_v30 = vadd.f32 %v1209_v40, %v3233_v12  ;;  %v1211_v10 = vpop.f32.mrb[6].mxu1  ;;  %1489 = vmatprep.subr.bf16.mxu0 %v1449_v42  ;;  %1530 = vmatprep.subr.bf16.mxu1 %v1451_v49 }
 0x1ca   : > { %v1137_v57 = vadd.f32 %v1136_v55, %v3233_v12  ;;  %v1138_v61 = vpop.f32.mrb[6].mxu0  ;;  %v1212_v8 = vadd.f32 %v1211_v10, %v3231_v43  ;;  %v1213_v24 = vpop.f32.mrb[7].mxu1  ;;  %1490 = vmatpush1.bf16.msra.mxu0 %v1448_v32  ;;  %1531 = vmatpush1.bf16.msra.mxu1 %v1450_v27  ;;  %v1400_v15 = vmax.f32 %v1208_v63, 0.0 }
 0x1cb   : > { %v1139_v13 = vadd.f32 %v1138_v61, %v3231_v43  ;;  %v1140_v11 = vpop.f32.mrb[7].mxu0  ;;  %v1214_v45 = vadd.f32 %v1213_v24, %v3231_v43  ;;  %v1398_v53 = vmax.f32 %v1135_v48, 0.0  ;;  %v1401_v2 = vmax.f32 %v1210_v30, 0.0  ;;  %v3257_v27 = vpop.permute.xlu1 %1069 }
 0x1cc   : > { %v1408_v21 = vmax.f32 %v1212_v8, 0.0  ;;  %v1141_v44 = vadd.f32 %v1140_v11, %v3231_v43  ;;  %v1399_v54 = vmax.f32 %v1137_v57, 0.0 }
 0x1cd   : > { %v1406_v20 = vmax.f32 %v1139_v13, 0.0  ;;  %v1409_v22 = vmax.f32 %v1214_v45, 0.0 }
 0x1ce   : > { %v1458_v17 = vpack.c.bf16 %v1408_v21, %v1400_v15  ;;  %v1407_v29 = vmax.f32 %v1141_v44, 0.0 }
 0x1cf   : > { %v1456_v39 = vpack.c.bf16 %v1406_v20, %v1398_v53  ;;  %v1459_v33 = vpack.c.bf16 %v1409_v22, %v1401_v2  ;;  %v1217_v59 = vpop.f32.mrb[8].mxu1 }
 0x1d0   : > { %v1457_v58 = vpack.c.bf16 %v1407_v29, %v1399_v54  ;;  %v1144_v16 = vpop.f32.mrb[8].mxu0  ;;  %v1218_v35 = vadd.f32 %v1217_v59, %v3245_v26  ;;  %v1219_v37 = vpop.f32.mrb[9].mxu1 }
 0x1d1   : > { %v1145_v7 = vadd.f32 %v1144_v16, %v3245_v26  ;;  %v1146_v36 = vpop.f32.mrb[9].mxu0  ;;  %v1220_v41 = vadd.f32 %v1219_v37, %v3245_v26  ;;  %v1221_v14 = vpop.f32.mrb[10].mxu1  ;;  %1532 = vmatprep.subr.bf16.mxu1 %v1459_v33  ;;  %v1446_v33 = vld [vmem:[%s3500_s6] sm:$0xf] }
 0x1d2   : > { %v1147_v3 = vadd.f32 %v1146_v36, %v3245_v26  ;;  %v1148_v25 = vpop.f32.mrb[10].mxu0  ;;  %v1222_v38 = vadd.f32 %v1221_v14, %v3243_v9  ;;  %1491 = vmatprep.subr.bf16.mxu0 %v1457_v58  ;;  %v1223_v51 = vpop.f32.mrb[11].mxu1  ;;  %1533 = vmatpush1.bf16.msra.mxu1 %v1458_v17  ;;  %v1416_v31 = vmax.f32 %v1218_v35, 0.0  ;;  %v3271_v36 = vpack.c.bf16 %v1446_v33, %v1446_v33 }
 0x1d3   : > { %v1149_v0 = vadd.f32 %v1148_v25, %v3243_v9  ;;  %v1150_v56 = vpop.f32.mrb[11].mxu0  ;;  %v1224_v28 = vadd.f32 %v1223_v51, %v3243_v9  ;;  %1492 = vmatpush1.bf16.msra.mxu0 %v1456_v39  ;;  %v1414_v1 = vmax.f32 %v1145_v7, 0.0  ;;  %v1417_v60 = vmax.f32 %v1220_v41, 0.0 }
 0x1d4   : > { %v1424_v23 = vmax.f32 %v1222_v38, 0.0  ;;  %v1151_v46 = vadd.f32 %v1150_v56, %v3243_v9  ;;  %v1415_v18 = vmax.f32 %v1147_v3, 0.0 }
 0x1d5   : > { %v1422_v19 = vmax.f32 %v1149_v0, 0.0  ;;  %v1425_v5 = vmax.f32 %v1224_v28, 0.0 }
 0x1d6   : > { %v1466_v52 = vpack.c.bf16 %v1424_v23, %v1416_v31  ;;  %v1423_v32 = vmax.f32 %v1151_v46, 0.0 }
 0x1d7   : > { %v1464_v42 = vpack.c.bf16 %v1422_v19, %v1414_v1  ;;  %v1467_v49 = vpack.c.bf16 %v1425_v5, %v1417_v60  ;;  %v1227_v50 = vpop.f32.mrb[12].mxu1 }
 0x1d8   : > { %v1465_v62 = vpack.c.bf16 %v1423_v32, %v1415_v18  ;;  %v1154_v63 = vpop.f32.mrb[12].mxu0  ;;  %v1228_v40 = vadd.f32 %v1227_v50, %v3257_v27  ;;  %v1229_v48 = vpop.f32.mrb[13].mxu1 }
 0x1d9   : > { %v1155_v55 = vadd.f32 %v1154_v63, %v3257_v27  ;;  %v1156_v30 = vpop.f32.mrb[13].mxu0  ;;  %v1230_v10 = vadd.f32 %v1229_v48, %v3257_v27  ;;  %v1231_v57 = vpop.f32.mrb[14].mxu1  ;;  %1534 = vmatprep.subr.bf16.mxu1 %v1467_v49 }
 0x1da   : > { %v1157_v61 = vadd.f32 %v1156_v30, %v3257_v27  ;;  %v1158_v8 = vpop.f32.mrb[14].mxu0  ;;  %v1232_v24 = vadd.f32 %v1231_v57, %v3255_v4  ;;  %1493 = vmatprep.subr.bf16.mxu0 %v1465_v62  ;;  %v1233_v13 = vpop.f32.mrb[15].mxu1  ;;  %1535 = vmatpush1.bf16.msra.mxu1 %v1466_v52  ;;  %v1432_v21 = vmax.f32 %v1228_v40, 0.0 }
 0x1db   : > { %v1159_v11 = vadd.f32 %v1158_v8, %v3255_v4  ;;  %v1160_v45 = vpop.f32.mrb[15].mxu0  ;;  %v1234_v15 = vadd.f32 %v1233_v13, %v3255_v4  ;;  %1494 = vmatpush1.bf16.msra.mxu0 %v1464_v42  ;;  %v1430_v2 = vmax.f32 %v1155_v55, 0.0  ;;  %v1433_v20 = vmax.f32 %v1230_v10, 0.0 }
 0x1dc   : > { %v1440_v44 = vmax.f32 %v1232_v24, 0.0  ;;  %v1161_v53 = vadd.f32 %v1160_v45, %v3255_v4  ;;  %v1431_v17 = vmax.f32 %v1157_v61, 0.0 }
 0x1dd   : > { %v1438_v22 = vmax.f32 %v1159_v11, 0.0  ;;  %v1441_v54 = vmax.f32 %v1234_v15, 0.0 }
 0x1de   : > { %v1474_v29 = vpack.c.bf16 %v1440_v44, %v1432_v21  ;;  %v1439_v39 = vmax.f32 %v1161_v53, 0.0 }
 0x1df   : > { %v1472_v59 = vpack.c.bf16 %v1438_v22, %v1430_v2  ;;  %v1475_v58 = vpack.c.bf16 %v1441_v54, %v1433_v20 }
 0x1e0   : > { %v1473_v16 = vpack.c.bf16 %v1439_v39, %v1431_v17  ;;  %v1270_v35 = vpop.f32.mrb[16].mxu0 }
 0x1e1   : > { %v1271_v37 = vadd.f32 %v1270_v35, %v3221_v47  ;;  %v1272_v7 = vpop.f32.mrb[17].mxu0  ;;  %1536 = vmatprep.subr.bf16.mxu1 %v1475_v58 }
 0x1e2   : > { %v1273_v41 = vadd.f32 %v1272_v7, %v3221_v47  ;;  %v1274_v14 = vpop.f32.mrb[18].mxu0  ;;  %1495 = vmatprep.subr.bf16.mxu0 %v1473_v16  ;;  %1537 = vmatpush1.bf16.msra.mxu1 %v1474_v29 }
 0x1e3   : > { %v1275_v25 = vadd.f32 %v1274_v14, %v3219_v34  ;;  %v1276_v38 = vpop.f32.mrb[19].mxu0  ;;  %1496 = vmatpush1.bf16.msra.mxu0 %v1472_v59  ;;  %v1386_v28 = vmax.f32 %v1271_v37, 0.0 }
 0x1e4   : > { %v1343_v3 = vpop.f32.mrb[16].mxu1  ;;  %v1277_v56 = vadd.f32 %v1276_v38, %v3219_v34  ;;  %v1387_v1 = vmax.f32 %v1273_v41, 0.0 }
 0x1e5   : > { %v1344_v51 = vadd.f32 %v1343_v3, %v3221_v47  ;;  %v1345_v0 = vpop.f32.mrb[17].mxu1  ;;  %v1394_v23 = vmax.f32 %v1275_v25, 0.0  ;;  %2163 = vmatmul.mubr.msk.bf16.vlgmr.msra.gmra.mrb[32].mxu1 %vm1077_vm0, %v3271_v36 }
 0x1e6   : > { %v1346_v31 = vadd.f32 %v1345_v0, %v3221_v47  ;;  %v1347_v46 = vpop.f32.mrb[18].mxu1  ;;  %v1395_v19 = vmax.f32 %v1277_v56, 0.0  ;;  %2162 = vmatmul.mubr.msk.bf16.vlgmr.msra.gmra.mrb[32].mxu0 %vm1077_vm0, %v3271_v36  ;;  %1644 = vmatprep.mubr.bf16.mxu1 %v3590_v6 }
 0x1e7   : > { %v1348_v60 = vadd.f32 %v1347_v46, %v3219_v34  ;;  %v1349_v5 = vpop.f32.mrb[19].mxu1  ;;  %v1452_v18 = vpack.c.bf16 %v1394_v23, %v1386_v28  ;;  %1603 = vmatprep.mubr.bf16.mxu0 %v3590_v6  ;;  %v1388_v47 = vmax.f32 %v1344_v51, 0.0 }
 0x1e8   : > { %v1350_v52 = vadd.f32 %v1349_v5, %v3219_v34  ;;  %v1453_v42 = vpack.c.bf16 %v1395_v19, %v1387_v1  ;;  %v1280_v49 = vpop.f32.mrb[20].mxu0  ;;  %v1389_v50 = vmax.f32 %v1346_v31, 0.0 }
 0x1e9   : > { %v1396_v32 = vmax.f32 %v1348_v60, 0.0  ;;  %v1281_v63 = vadd.f32 %v1280_v49, %v3233_v12  ;;  %v1282_v40 = vpop.f32.mrb[21].mxu0 }
 0x1ea   : > { %v1397_v62 = vmax.f32 %v1350_v52, 0.0  ;;  %v1283_v55 = vadd.f32 %v1282_v40, %v3233_v12  ;;  %v1284_v30 = vpop.f32.mrb[22].mxu0  ;;  %1571 = vmatprep.subr.bf16.mxu0 %v1453_v42 }
 0x1eb   : > { %v1454_v48 = vpack.c.bf16 %v1396_v32, %v1388_v47  ;;  %v1285_v34 = vadd.f32 %v1284_v30, %v3231_v43  ;;  %v1286_v61 = vpop.f32.mrb[23].mxu0  ;;  %1572 = vmatpush1.bf16.msra.mxu0 %v1452_v18  ;;  %v1402_v13 = vmax.f32 %v1281_v63, 0.0 }
 0x1ec   : > { %v1455_v10 = vpack.c.bf16 %v1397_v62, %v1389_v50  ;;  %v1353_v57 = vpop.f32.mrb[20].mxu1  ;;  %v1287_v24 = vadd.f32 %v1286_v61, %v3231_v43  ;;  %v1403_v21 = vmax.f32 %v1283_v55, 0.0 }
 0x1ed   : > { %v1354_v6 = vadd.f32 %v1353_v57, %v3233_v12  ;;  %v1355_v8 = vpop.f32.mrb[21].mxu1  ;;  %v1410_v45 = vmax.f32 %v1285_v34, 0.0 }
 0x1ee   : > { %v1356_v11 = vadd.f32 %v1355_v8, %v3233_v12  ;;  %v1357_v15 = vpop.f32.mrb[22].mxu1  ;;  %1612 = vmatprep.subr.bf16.mxu1 %v1455_v10  ;;  %v1411_v53 = vmax.f32 %v1287_v24, 0.0 }
 0x1ef   : > { %v1358_v44 = vadd.f32 %v1357_v15, %v3231_v43  ;;  %v1359_v2 = vpop.f32.mrb[23].mxu1  ;;  %1613 = vmatpush1.bf16.msra.mxu1 %v1454_v48  ;;  %v1460_v20 = vpack.c.bf16 %v1410_v45, %v1402_v13  ;;  %v1404_v54 = vmax.f32 %v1354_v6, 0.0 }
 0x1f0   : > { %v1360_v22 = vadd.f32 %v1359_v2, %v3231_v43  ;;  %v1461_v29 = vpack.c.bf16 %v1411_v53, %v1403_v21  ;;  %v1290_v39 = vpop.f32.mrb[24].mxu0  ;;  %v1405_v33 = vmax.f32 %v1356_v11, 0.0 }
 0x1f1   : > { %v1412_v17 = vmax.f32 %v1358_v44, 0.0  ;;  %v1291_v12 = vadd.f32 %v1290_v39, %v3245_v26  ;;  %v1292_v58 = vpop.f32.mrb[25].mxu0  ;;  %v3314_v39 = vpop.permute.xlu1 %1483 }
 0x1f2   : > { %v1413_v59 = vmax.f32 %v1360_v22, 0.0  ;;  %v1293_v35 = vadd.f32 %v1292_v58, %v3245_v26  ;;  %v1294_v37 = vpop.f32.mrb[26].mxu0  ;;  %1573 = vmatprep.subr.bf16.mxu0 %v1461_v29 }
 0x1f3   : > { %v1462_v16 = vpack.c.bf16 %v1412_v17, %v1404_v54  ;;  %v1295_v14 = vadd.f32 %v1294_v37, %v3243_v9  ;;  %v1296_v3 = vpop.f32.mrb[27].mxu0  ;;  %1574 = vmatpush1.bf16.msra.mxu0 %v1460_v20  ;;  %v1418_v51 = vmax.f32 %v1291_v12, 0.0  ;;  %v2354_v17 = vmov 1983009808  }
 0x1f4   : > { %v1463_v7 = vpack.c.bf16 %v1413_v59, %v1405_v33  ;;  %v1363_v41 = vpop.f32.mrb[24].mxu1  ;;  %v1297_v38 = vadd.f32 %v1296_v3, %v3243_v9  ;;  %v1419_v31 = vmax.f32 %v1293_v35, 0.0  ;;  %v1703_v29 = vunpack.c.l.s4 %v2354_v17 }
 0x1f5   : > { %v1364_v43 = vadd.f32 %v1363_v41, %v3245_v26  ;;  %v1365_v25 = vpop.f32.mrb[25].mxu1  ;;  %v1426_v56 = vmax.f32 %v1295_v14, 0.0 }
 0x1f6   : > { %v1366_v0 = vadd.f32 %v1365_v25, %v3245_v26  ;;  %v1367_v28 = vpop.f32.mrb[26].mxu1  ;;  %1614 = vmatprep.subr.bf16.mxu1 %v1463_v7  ;;  %v1427_v46 = vmax.f32 %v1297_v38, 0.0  ;;  %v3323_v38 = vpop.permute.xlu0 %1664 }
 0x1f7   : > { %v1368_v23 = vadd.f32 %v1367_v28, %v3243_v9  ;;  %v1369_v1 = vpop.f32.mrb[27].mxu1  ;;  %1615 = vmatpush1.bf16.msra.mxu1 %v1462_v16  ;;  %v1468_v60 = vpack.c.bf16 %v1426_v56, %v1418_v51  ;;  %v1420_v5 = vmax.f32 %v1364_v43, 0.0  ;;  %v3597_v16 = vld [vmem:[#allocation8_spill] sm:$0xff] }
 0x1f8   : > { %v1370_v19 = vadd.f32 %v1369_v1, %v3243_v9  ;;  %v1469_v52 = vpack.c.bf16 %v1427_v46, %v1419_v31  ;;  %v1300_v47 = vpop.f32.mrb[28].mxu0  ;;  %v1421_v32 = vmax.f32 %v1366_v0, 0.0  ;;  %v3326_v1 = vpop.permute.xlu1 %1786 }
 0x1f9   : > { %v1428_v18 = vmax.f32 %v1368_v23, 0.0  ;;  %v1301_v26 = vadd.f32 %v1300_v47, %v3257_v27  ;;  %v1302_v49 = vpop.f32.mrb[29].mxu0 }
 0x1fa   : > { %v1429_v42 = vmax.f32 %v1370_v19, 0.0  ;;  %v1303_v62 = vadd.f32 %v1302_v49, %v3257_v27  ;;  %v1304_v63 = vpop.f32.mrb[30].mxu0  ;;  %1575 = vmatprep.subr.bf16.mxu0 %v1469_v52 }
 0x1fb   : > { %v1470_v50 = vpack.c.bf16 %v1428_v18, %v1420_v5  ;;  %v1305_v55 = vadd.f32 %v1304_v63, %v3255_v4  ;;  %v1306_v30 = vpop.f32.mrb[31].mxu0  ;;  %1576 = vmatpush1.bf16.msra.mxu0 %v1468_v60  ;;  %v1434_v34 = vmax.f32 %v1301_v26, 0.0 }
 0x1fc   : > { %v1471_v40 = vpack.c.bf16 %v1429_v42, %v1421_v32  ;;  %v1373_v48 = vpop.f32.mrb[28].mxu1  ;;  %v1307_v57 = vadd.f32 %v1306_v30, %v3255_v4  ;;  %v1435_v24 = vmax.f32 %v1303_v62, 0.0 }
 0x1fd   : > { %v1374_v9 = vadd.f32 %v1373_v48, %v3257_v27  ;;  %v1375_v10 = vpop.f32.mrb[29].mxu1  ;;  %v1442_v6 = vmax.f32 %v1305_v55, 0.0 }
 0x1fe   : > { %v1376_v61 = vadd.f32 %v1375_v10, %v3257_v27  ;;  %v1377_v8 = vpop.f32.mrb[30].mxu1  ;;  %1616 = vmatprep.subr.bf16.mxu1 %v1471_v40  ;;  %v1443_v11 = vmax.f32 %v1307_v57, 0.0 }
 0x1ff   : > { %v1378_v13 = vadd.f32 %v1377_v8, %v3255_v4  ;;  %v1379_v45 = vpop.f32.mrb[31].mxu1  ;;  %1617 = vmatpush1.bf16.msra.mxu1 %v1470_v50  ;;  %v1476_v15 = vpack.c.bf16 %v1442_v6, %v1434_v34  ;;  %v1436_v44 = vmax.f32 %v1374_v9, 0.0 }
 0x200   : > { %v1380_v21 = vadd.f32 %v1379_v45, %v3255_v4  ;;  %v1477_v2 = vpack.c.bf16 %v1443_v11, %v1435_v24  ;;  %v1437_v20 = vmax.f32 %v1376_v61, 0.0  ;;  %v1704_v4 = vunpack.c.0.s8 %v1703_v29 }
 0x201   : > { %v1444_v53 = vmax.f32 %v1378_v13, 0.0  ;;  %v2355_v45 = vmov 1966171168  }
 0x202   : > { %v1445_v22 = vmax.f32 %v1380_v21, 0.0  ;;  %1577 = vmatprep.subr.bf16.mxu0 %v1477_v2  ;;  %v3318_v35 = vsub.s32 %v1704_v4, %v3597_v16 }
 0x203   : > { %v1478_v54 = vpack.c.bf16 %v1444_v53, %v1436_v44  ;;  %1578 = vmatpush1.bf16.msra.mxu0 %v1476_v15  ;;  %v1967_v15 = vunpack.c.l.s4 %v2355_v45 }
 0x204   : > { %v1479_v27 = vpack.c.bf16 %v1445_v22, %v1437_v20 }
 0x205   : > { %v1968_v17 = vunpack.c.0.s8 %v1967_v15 }
 0x206   : > { %1618 = vmatprep.subr.bf16.mxu1 %v1479_v27  ;;  %2164 = vmatmul.mubr.msk.bf16.vlgmr.msra.gmra.mrb[36].mxu0 %vm1077_vm0, %v3271_v36 }
 0x207   : > { %1619 = vmatpush1.bf16.msra.mxu1 %v1478_v54 }
 0x20a   : > { %2165 = vmatmul.mubr.msk.bf16.vlgmr.msra.gmra.mrb[36].mxu1 %vm1077_vm0, %v3271_v36 }
 0x2b8   : > { %v1564_v33 = vpop.f32.mrb[32].mxu1 }
 0x2b9   : > { %v1523_v59 = vpop.f32.mrb[32].mxu0  ;;  %v1565_v12 = vadd.f32 %v1564_v33, %v3314_v39  ;;  %v1566_v58 = vpop.f32.mrb[33].mxu1 }
 0x2ba   : > { %v1524_v37 = vadd.f32 %v1523_v59, %v3314_v39  ;;  %v1525_v7 = vpop.f32.mrb[33].mxu0  ;;  %v1567_v41 = vadd.f32 %v1566_v58, %v3314_v39  ;;  %v1568_v14 = vpop.f32.mrb[34].mxu1 }
 0x2bb   : > { %v1655_v36 = vmax.f32 %v1565_v12, 0.0  ;;  %v1526_v3 = vadd.f32 %v1525_v7, %v3314_v39  ;;  %v1527_v43 = vpop.f32.mrb[34].mxu0  ;;  %v1569_v25 = vpop.f32.mrb[35].mxu1 }
 0x2bc   : > { %v1653_v51 = vmax.f32 %v1524_v37, 0.0  ;;  %v1656_v0 = vmax.f32 %v1567_v41, 0.0  ;;  %v1747_v56 = vcombine.low %v1565_v12, %v1567_v41  ;;  %v1528_v28 = vpop.f32.mrb[35].mxu0  ;;  %v3345_v43 = vsub.s32 %v1968_v17, %v3597_v16 }
 0x2bd   : > { %v1669_v31 = vmul.f32 %v3323_v38, %v1655_v36  ;;  %v1654_v23 = vmax.f32 %v1526_v3, 0.0  ;;  %v1746_v46 = vcombine.low %v1524_v37, %v1526_v3 }
 0x2be   : > { %v1667_v60 = vmul.f32 %v3323_v38, %v1653_v51  ;;  %v1670_v19 = vmul.f32 %v3323_v38, %v1656_v0  ;;  %v3331_v5 = vrot.slane %v1747_v56, %v3318_v35 }
 0x2bf   : > { %v1680_v18 = vmul.f32 1.442695, %v1669_v31  ;;  %v1891_v52 = vmul.f32 %v3326_v1, %v1669_v31  ;;  %v1668_v47 = vmul.f32 %v3323_v38, %v1654_v23  ;;  %v1754_v32 = vrot.slane %v1746_v46, %v3318_v35 }
 0x2c0   : > { %v1676_v42 = vmul.f32 1.442695, %v1667_v60  ;;  %v1889_v26 = vmul.f32 %v3326_v1, %v1667_v60  ;;  %v1682_v49 = vmul.f32 1.442695, %v1670_v19  ;;  %v1892_v50 = vmul.f32 %v3326_v1, %v1670_v19  ;;  %v2253_v19 = vld [vmem:[%s2562_s28] sm:$0xff] }
 0x2c1   : > { %2237 = vpow2.f32 %v1680_v18  ;;  %v1912_v62 = vsel %vm1897_vm1, %v1891_v52, 0.0  ;;  %v1678_v63 = vmul.f32 1.442695, %v1668_v47  ;;  %v1890_v40 = vmul.f32 %v3326_v1, %v1668_v47 }
 0x2c2   : > { %2239 = vpow2.f32 %v1676_v42  ;;  %v1898_v48 = vsel %vm1897_vm1, %v1889_v26, 0.0  ;;  %v1913_v55 = vrot.slane %v1912_v62, 4  ;;  %v1762_v30 = vcombine.high %v1754_v32, %v3331_v5 }
 0x2c3   : > { %v1899_v9 = vrot.slane %v1898_v48, 4  ;;  %2241 = vpow2.f32 %v1678_v63  ;;  %v1905_v10 = vsel %vm1897_vm1, %v1890_v40, 0.0  ;;  %v1919_v57 = vsel %vm1897_vm1, %v1892_v50, 0.0 }
 0x2c4   : > { %v1914_v34 = vadd.f32 %v1913_v55, %v1912_v62  ;;  %v1906_v61 = vrot.slane %v1905_v10, 4  ;;  %2243 = vpow2.f32 %v1682_v49  ;;  %v1920_v6 = vrot.slane %v1919_v57, 4 }
 0x2c5   : > { %v1900_v8 = vadd.f32 %v1899_v9, %v1898_v48 }
 0x2c6   : > { %v1915_v24 = vrot.slane %v1914_v34, 2  ;;  %v1907_v13 = vadd.f32 %v1906_v61, %v1905_v10  ;;  %v1921_v11 = vadd.f32 %v1920_v6, %v1919_v57 }
 0x2c7   : > { %v1901_v21 = vrot.slane %v1900_v8, 2 }
 0x2c8   : > { %v1916_v44 = vadd.f32 %v1915_v24, %v1914_v34  ;;  %v1908_v53 = vrot.slane %v1907_v13, 2  ;;  %v1922_v2 = vrot.slane %v1921_v11, 2 }
 0x2c9   : > { %v1902_v20 = vadd.f32 %v1901_v21, %v1900_v8 }
 0x2ca   : > { %v1917_v22 = vrot.slane %v1916_v44, 1  ;;  %v1909_v54 = vadd.f32 %v1908_v53, %v1907_v13  ;;  %v1923_v27 = vadd.f32 %v1922_v2, %v1921_v11 }
 0x2cb   : > { %v2238_v29 = vpop.eup %2237  ;;  %v1903_v4 = vrot.slane %v1902_v20, 1 }
 0x2cc   : > { %v2240_v33 = vpop.eup %2239  ;;  %v1918_v59 = vadd.f32 %v1917_v22, %v1916_v44  ;;  %v1910_v12 = vrot.slane %v1909_v54, 1  ;;  %v1924_v58 = vrot.slane %v1923_v27, 1 }
 0x2cd   : > { %v2242_v37 = vpop.eup %2241  ;;  %v1904_v7 = vadd.f32 %v1903_v4, %v1902_v20 }
 0x2ce   : > { %v2244_v41 = vpop.eup %2243  ;;  %v1911_v14 = vadd.f32 %v1910_v12, %v1909_v54  ;;  %v1700_v36 = vcombine.low %v2240_v33, %v2242_v37  ;;  %v1925_v3 = vadd.f32 %v1924_v58, %v1923_v27 }
 0x2cf   : > { %v1701_v25 = vcombine.low %v2238_v29, %v2244_v41 }
 0x2d0   : > { %v1708_v51 = vrot.slane %v1700_v36, %v3318_v35  ;;  %v1962_v0 = vcombine.low %v1904_v7, %v1911_v14  ;;  %v1963_v56 = vcombine.low %v1918_v59, %v1925_v3 }
 0x2d1   : > { %v1715_v28 = vrot.slane %v1701_v25, %v3318_v35 }
 0x2d2   : > { %v3350_v31 = vrot.slane %v1962_v0, %v3345_v43  ;;  %v3353_v23 = vrot.slane %v1963_v56, %v3345_v43 }
 0x2d3   : > { %v1716_v46 = vcombine.low %v1708_v51, %v1715_v28 }
 0x2d4   : > { %v1994_v60 = vcombine.low %v3350_v31, %v3353_v23 }
 0x2d5   : > { %v1736_v16 = vmul.f32 %v2253_v19, %v1716_v46 }
 0x2d7   : > { %v1782_v5 = vadd.f32 %v1762_v30, %v1736_v16 }
 0x2d9   : > { %v1791_v18 = vcombine.high %v1782_v5, %v1782_v5  ;;  %v1798_v52 = vrot.slane %v1782_v5, %v3318_v35  ;;  %v1605_v47 = vpop.f32.mrb[36].mxu0 }
 0x2da   : > { %v1606_v32 = vadd.f32 %v1605_v47, %v3314_v39  ;;  %v1607_v42 = vpop.f32.mrb[37].mxu0 }
 0x2db   : > { %v1805_v26 = vrot.slane %v1791_v18, %v3318_v35  ;;  %v1806_v49 = vcombine.high %v1798_v52, %v1798_v52  ;;  %v1608_v50 = vadd.f32 %v1607_v42, %v3314_v39  ;;  %v1609_v62 = vpop.f32.mrb[38].mxu0  ;;  %v1833_v9 = vmul.f32 %v1798_v52, %v3326_v1 }
 0x2dc   : > { %v1657_v63 = vmax.f32 %v1606_v32, 0.0  ;;  %v1610_v48 = vpop.f32.mrb[39].mxu0 }
 0x2dd   : > { %v1646_v40 = vpop.f32.mrb[36].mxu1  ;;  %v1807_v55 = vcombine.high %v1805_v26, %v1805_v26  ;;  %v1834_v30 = vmul.f32 %v1806_v49, %v3326_v1  ;;  %v1658_v61 = vmax.f32 %v1608_v50, 0.0  ;;  %v1763_v6 = vcombine.low %v1606_v32, %v1608_v50  ;;  %v3598_v50 = vld [vmem:[#allocation9_spill] sm:$0xff] }
 0x2de   : > { %v1647_v10 = vadd.f32 %v1646_v40, %v3314_v39  ;;  %v1648_v57 = vpop.f32.mrb[37].mxu1  ;;  %v1671_v34 = vmul.f32 %v3323_v38, %v1657_v63  ;;  %v1835_v13 = vmul.f32 %v1805_v26, %v3326_v1 }
 0x2df   : > { %v1649_v8 = vadd.f32 %v1648_v57, %v3314_v39  ;;  %v1650_v24 = vpop.f32.mrb[38].mxu1  ;;  %v1836_v15 = vmul.f32 %v1807_v55, %v3326_v1  ;;  %v1849_v21 = vcombine.low %v1833_v9, %v1834_v30  ;;  %v1672_v2 = vmul.f32 %v3323_v38, %v1658_v61 }
 0x2e0   : > { %v1659_v11 = vmax.f32 %v1647_v10, 0.0  ;;  %v1651_v45 = vpop.f32.mrb[39].mxu1  ;;  %v1684_v44 = vmul.f32 1.442695, %v1671_v34  ;;  %v1893_v53 = vmul.f32 %v3326_v1, %v1671_v34  ;;  %v3372_v20 = vrot.slane %v1763_v6, %v3318_v35 }
 0x2e1   : > { %v1660_v39 = vmax.f32 %v1649_v8, 0.0  ;;  %v1764_v54 = vcombine.low %v1647_v10, %v1649_v8  ;;  %v1850_v27 = vcombine.low %v1835_v13, %v1836_v15  ;;  %v1686_v29 = vmul.f32 1.442695, %v1672_v2 }
 0x2e2   : > { %v1673_v22 = vmul.f32 %v3323_v38, %v1659_v11  ;;  %2245 = vpow2.f32 %v1684_v44  ;;  %v1926_v17 = vsel %vm1897_vm1, %v1893_v53, 0.0  ;;  %v1894_v4 = vmul.f32 %v3326_v1, %v1672_v2 }
 0x2e3   : > { %v1927_v33 = vrot.slane %v1926_v17, 4  ;;  %v1674_v58 = vmul.f32 %v3323_v38, %v1660_v39  ;;  %2247 = vpow2.f32 %v1686_v29  ;;  %v1778_v7 = vrot.slane %v1764_v54, %v3318_v35  ;;  %v2254_v39 = vld [vmem:[%s2562_s28 + $0x8] sm:$0xff] }
 0x2e4   : > { %v1688_v59 = vmul.f32 1.442695, %v1673_v22  ;;  %v1895_v12 = vmul.f32 %v3326_v1, %v1673_v22  ;;  %v1933_v37 = vsel %vm1897_vm1, %v1894_v4, 0.0  ;;  %v1857_v28 = vrot.slane %v1849_v21, %v3318_v35 }
 0x2e5   : > { %v1928_v41 = vadd.f32 %v1927_v33, %v1926_v17  ;;  %v1934_v36 = vrot.slane %v1933_v37, 4  ;;  %v1690_v25 = vmul.f32 1.442695, %v1674_v58  ;;  %v1779_v51 = vcombine.high %v3372_v20, %v1778_v7 }
 0x2e6   : > { %2249 = vpow2.f32 %v1688_v59  ;;  %v1940_v14 = vsel %vm1897_vm1, %v1895_v12, 0.0  ;;  %v1896_v0 = vmul.f32 %v3326_v1, %v1674_v58  ;;  %v1864_v46 = vrot.slane %v1850_v27, %v3318_v35 }
 0x2e7   : > { %v1941_v3 = vrot.slane %v1940_v14, 4  ;;  %v1929_v38 = vrot.slane %v1928_v41, 2  ;;  %v1935_v56 = vadd.f32 %v1934_v36, %v1933_v37  ;;  %2251 = vpow2.f32 %v1690_v25 }
 0x2e8   : > { %v1947_v16 = vsel %vm1897_vm1, %v1896_v0, 0.0  ;;  %v1865_v47 = vcombine.low %v1857_v28, %v1864_v46  ;;  %v2002_v29 = vrot.slane %v1994_v60, %v3345_v43 }
 0x2e9   : > { %v1942_v19 = vadd.f32 %v1941_v3, %v1940_v14  ;;  %v1930_v5 = vadd.f32 %v1929_v38, %v1928_v41  ;;  %v1936_v18 = vrot.slane %v1935_v56, 2  ;;  %v1948_v52 = vrot.slane %v1947_v16, 4 }
 0x2ea   : > { %v1885_v62 = vadd.f32 %v1865_v47, %v3598_v50 }
 0x2eb   : > { %v1943_v32 = vrot.slane %v1942_v19, 2  ;;  %v1931_v42 = vrot.slane %v1930_v5, 1  ;;  %v1937_v26 = vadd.f32 %v1936_v18, %v1935_v56  ;;  %v1949_v49 = vadd.f32 %v1948_v52, %v1947_v16 }
 0x2ec   : > { %v2246_v63 = vpop.eup %2245  ;;  %1887 = vst [vmem:[%s3392_s29] sm:$0xff] %v1885_v62 }
 0x2ed   : > { %v1944_v40 = vadd.f32 %v1943_v32, %v1942_v19  ;;  %v1932_v48 = vadd.f32 %v1931_v42, %v1930_v5  ;;  %v1938_v55 = vrot.slane %v1937_v26, 1  ;;  %v1950_v9 = vrot.slane %v1949_v49, 2  ;;  %v2248_v30 = vpop.eup %2247 }
 0x2ee   : > { %v1717_v61 = vcombine.low %v2246_v63, %v2248_v30 }
 0x2ef   : > { %v1945_v10 = vrot.slane %v1944_v40, 1  ;;  %v1939_v34 = vadd.f32 %v1938_v55, %v1937_v26  ;;  %v1951_v6 = vadd.f32 %v1950_v9, %v1949_v49 }
 0x2f0   : > { %v2250_v57 = vpop.eup %2249  ;;  %v1725_v15 = vrot.slane %v1717_v61, %v3318_v35 }
 0x2f1   : > { %v1946_v8 = vadd.f32 %v1945_v10, %v1944_v40  ;;  %v1952_v24 = vrot.slane %v1951_v6, 1  ;;  %v1964_v13 = vcombine.low %v1932_v48, %v1939_v34  ;;  %v2252_v11 = vpop.eup %2251 }
 0x2f2   : > { %v1718_v45 = vcombine.low %v2250_v57, %v2252_v11 }
 0x2f3   : > { %v1953_v21 = vadd.f32 %v1952_v24, %v1951_v6  ;;  %v1986_v2 = vrot.slane %v1964_v13, %v3345_v43 }
 0x2f4   : > { %v1732_v44 = vrot.slane %v1718_v45, %v3318_v35 }
 0x2f5   : > { %v1965_v53 = vcombine.low %v1946_v8, %v1953_v21 }
 0x2f6   : > { %v1733_v20 = vcombine.low %v1725_v15, %v1732_v44 }
 0x2f7   : > { %v1993_v22 = vrot.slane %v1965_v53, %v3345_v43 }
 0x2f8   : > { %v1737_v54 = vmul.f32 %v2254_v39, %v1733_v20 }
 0x2f9   : > { %v1995_v27 = vcombine.low %v1986_v2, %v1993_v22 }
 0x2fa   : > { %v1783_v17 = vadd.f32 %v1779_v51, %v1737_v54 }
 0x2fb   : > { %v2009_v4 = vrot.slane %v1995_v27, %v3345_v43 }
 0x2fc   : > { %v1808_v33 = vcombine.high %v1783_v17, %v1783_v17  ;;  %v1815_v59 = vrot.slane %v1783_v17, %v3318_v35 }
 0x2fd   : > { %v2010_v12 = vcombine.low %v2002_v29, %v2009_v4 }
 0x2fe   : > { %v1822_v58 = vrot.slane %v1808_v33, %v3318_v35  ;;  %v1823_v31 = vcombine.high %v1815_v59, %v1815_v59 }
 0x2ff   : > { %2012 = vst [vmem:[%s364_s12] sm:$0xff] %v2010_v12 }
 0x300   : > { %2268 = shalt.err (!%p2265_p3)
}
 0x301   : > { %s2269_s12 = scalar_lea.hbm %s3411_s21, 128  ;;  %s2273_s30 = scalar_lea.hbm %s3504_s10, 256 }
 0x302   : > { %p2270_p4 = scmp.ne.s32.totalorder %s3411_s21, %s2269_s12  ;;  %p2274_p9 = scmp.lt.u32.totalorder %s3411_s21, %s3504_s10 }
 0x303   : > { %p2275_p10 = scmp.lt.u32.totalorder %s2273_s30, %s2269_s12  ;;  %p2277_p12 = scmp.lt.u32.totalorder %s2269_s12, %s3411_s21 }
 0x304   : > { %p2271_p7 = pnand %p2270_p4, %p2451_p5 }
 0x305   : > { %p2276_p11 = por %p2275_p10, %p2274_p9 }
 0x306   : > { %p2272_p8 = pneg %p2271_p7 }
 0x307   : > { %p2278_p13 = por %p2277_p12, %p2276_p11 }
 0x309   : > { %p2279_p0 = pnand %p2278_p13, %p2272_p8 }
 0x30b   : > { %2282 = shalt.err (!%p2279_p0)
}
 0x30c   : > { %2177 = dma.vmem_to_hbm [thread:$0]  (%p2451_p5), %s3413_s18, 128, %s3411_s21, %s2019_s25   ;;  %v1824_v43 = vcombine.high %v1822_v58, %v1822_v58  ;;  %v1837_v23 = vmul.f32 %v1815_v59, %v3326_v1  ;;  %v1838_v60 = vmul.f32 %v1823_v31, %v3326_v1  ;;  %v1839_v37 = vmul.f32 %v1822_v58, %v3326_v1  ;;  %v3599_v51 = vld [vmem:[#allocation10_spill] sm:$0xff] }
 0x30d   : > { %s2174_s1 = sshll.u32 %s2434_s17, 8  ;;  %s2033_s18 = sshll.u32 %s3392_s29, 4  ;;  %s3452_s18 = int_to_ptr.vmem [resolvable:$true] %s2033_s18 }
 0x30e   : > { %v1840_v7 = vmul.f32 %v1824_v43, %v3326_v1  ;;  %v1866_v41 = vcombine.low %v1837_v23, %v1838_v60  ;;  %s3450_s27 = scalar_lea.hbm %s3503_s9, %s2174_s1  ;;  %s2014_s11 = scalar_lea.sflag [#allocation3], %s3382_s26 }
 0x30f   : > { %s2283_s12 = scalar_lea.vmem %s3452_s18, 256  ;;  %s2357_s17 = smov [#allocation2]  }
 0x310   : > { %v1867_v14 = vcombine.low %v1839_v37, %v1840_v7  ;;  %v1874_v36 = vrot.slane %v1866_v41, %v3318_v35  ;;  %p2284_p1 = scmp.ne.s32.totalorder %s3452_s18, %s2283_s12  ;;  %s2287_s28 = sshll.u32 %s2357_s17, 4  ;;  %s2288_s28 = int_to_ptr.vmem [resolvable:$false] %s2287_s28 }
 0x311   : > { %s2289_s20 = scalar_lea.vmem %s2288_s28, 512  ;;  %p2290_p4 = scmp.lt.s32.totalorder %s3452_s18, %s2288_s28 }
 0x312   : > { %v1881_v3 = vrot.slane %v1867_v14, %v3318_v35  ;;  %p2285_p2 = pnand %p2284_p1, %p2451_p5  ;;  %p2291_p7 = scmp.lt.s32.totalorder %s2289_s20, %s2283_s12 }
 0x314   : > { %v1882_v25 = vcombine.low %v1874_v36, %v1881_v3  ;;  %p2286_p3 = pneg %p2285_p2  ;;  %p2292_p8 = por %p2291_p7, %p2290_p4 }
 0x316   : > { %v1886_v0 = vadd.f32 %v1882_v25, %v3599_v51  ;;  %p2293_p9 = pnand %p2292_p8, %p2286_p3 }
 0x318   : > { %1888 = vst [vmem:[%s3392_s29 + $0x8] sm:$0xff] %v1886_v0 }
 0x319   : > { %2296 = shalt.err (!%p2293_p9)
}
 0x31a   : > { %s2297_s26 = scalar_lea.hbm %s3450_s27, 256  ;;  %s2301_s0 = scalar_lea.hbm %s3503_s9, 512 }
 0x31b   : > { %p2298_p10 = scmp.ne.s32.totalorder %s3450_s27, %s2297_s26  ;;  %p2302_p13 = scmp.lt.u32.totalorder %s3450_s27, %s3503_s9 }
 0x31c   : > { %p2303_p0 = scmp.lt.u32.totalorder %s2301_s0, %s2297_s26  ;;  %p2305_p2 = scmp.lt.u32.totalorder %s2297_s26, %s3450_s27 }
 0x31d   : > { %p2299_p11 = pnand %p2298_p10, %p2451_p5 }
 0x31e   : > { %p2304_p1 = por %p2303_p0, %p2302_p13 }
 0x31f   : > { %p2300_p12 = pneg %p2299_p11 }
 0x320   : > { %p2306_p3 = por %p2305_p2, %p2304_p1 }
 0x322   : > { %p2307_p4 = pnand %p2306_p3, %p2300_p12 }
 0x324   : > { %2310 = shalt.err (!%p2307_p4)
}
 0x325   : > { %2176 = dma.vmem_to_hbm [thread:$0]  (%p2451_p5), %s3452_s18, 256, %s3450_s27, %s2014_s11  }
 0x326 PF: > { %p2187_p7 = scmp.ge.s32.totalorder %s2349_s16, 2  ;;  %s2059_s25 = sand.u32 1, %s2337_s13  }
 0x327   : > { %s2060_s12 = scalar_lea.sflag [#allocation3], %s2059_s25 }
 0x328   : > { %p2181_p8 = pnand %p2187_p7, %p2455_p6 }
 0x32a   : > { %2328 = dma.done.wait (!%p2181_p8), %s2060_s12, 256  }
 0x32b   : > { %2330 = vsyncadd (!%p2181_p8), %s2060_s12, 4294967040  ;;  %s2069_s17 = scalar_lea.sflag [#allocation5], %s2059_s25 }
 0x32c   : > { %2332 = dma.done.wait (!%p2181_p8), %s2069_s17, 128  }
 0x32d   : > { %2334 = vsyncadd (!%p2181_p8), %s2069_s17, 4294967168  ;;  %p24_p5 = scmp.ge.s32.totalorder %s2438_s19, 4   ;;  %s3600_s13 = smov %s2341_s14 }
 0x32e   : > { %s3601_s14 = smov %s2345_s15  ;;  %s3602_s15 = smov %s2449_s22 }
 0x32f   : > { %s3603_s16 = smov %s2438_s19  ;;  %26 = sbr.rel (!%p24_p5) target bundleno = 8 (0x8), region = 108 }
 0x336   :  { %2074 = vsyncpa [#allocation3], 1 }
 0x337   :  { %2076 = vsyncpa [#allocation3 + $0x1], 1 }
 0x338   :  { %2077 = vsyncpa [#allocation5], 1 }
 0x339   :  { %2079 = vsyncpa [#allocation5 + $0x1], 1 }

</bundles_post_ra>
